<compile_context>
chip_gen: v5e
topology: v5e:2x2
jax: 0.10.0
libtpu: 0.0.40
codegen_flags: <defaults>
</compile_context>

<pallas_src>
import functools
import math

import jax
import jax.numpy as jnp
from jax import lax
from jax.experimental import pallas as pl
from jax.experimental.pallas import tpu as pltpu

_LANE = 128   # vreg lane width; every encoding / query segment is padded to this
_BB = 8       # instances per grid step (multiple of 8 => sublane-legal 2-D ctx block)


def _round_up(x, m):
    return ((x + m - 1) // m) * m


# ----------------------------- Pallas kernel ------------------------------ #

def _attend(seq, q):
    """seq: (n, 128), q: (1, 128); lanes beyond the true encoding width are zero.
    Returns softmax(seq @ q^T) @ seq as (1, 128) f32 (zeros stay in padded lanes).

    Normalization is hoisted past the attended matmul so the XLU lane-sum overlaps the
    MXU matmul; the divide is a single EUP vrcp (approx=True)."""
    f32 = jnp.float32
    logits = lax.dot_general(q, seq, (((1,), (1,)), ((), ())),
                             preferred_element_type=f32)          # (1, n)
    m = jnp.max(logits, axis=-1, keepdims=True)
    p = jnp.exp(logits - m)                                       # (1, n)
    s = jnp.sum(p, axis=-1, keepdims=True)                        # (1, 1)
    unnorm = jnp.dot(p, seq, preferred_element_type=f32)          # (1, 128)
    return unnorm * pl.reciprocal(s, approx=True)


def _sym_double_attention_kernel(seq1_ref, seq2_ref, ctx_ref,
                                 wq_ref, wbd_ref, out_ref, *, bb):
    f32 = jnp.float32
    P = _LANE

    # One wide matmul for the ctx-query projections of ALL bb instances in this step.
    # wq lane segments: [ W11.T | W21.T | W12.T[:c] | W22.T[:c] ], each padded to 128 lanes.
    q_all = jnp.dot(ctx_ref[...], wq_ref[...], preferred_element_type=f32)   # (bb, 512)
    q11 = q_all[:, 0 * P:1 * P]      # branch-1 first queries  (over seq1)
    q21 = q_all[:, 1 * P:2 * P]      # branch-2 first queries  (over seq2)
    qc = q_all[:, 2 * P:4 * P]       # ctx halves of both second-stage queries (q12c | q22c)

    # Stage 1: the 2*bb independent first attentions (statically unrolled so the
    # scheduler interleaves their short serial MXU/EUP chains).
    att_rows = []
    for i in range(bb):
        a1 = _attend(seq1_ref[i], q11[i:i + 1])                   # (1, 128) att1a
        a2 = _attend(seq2_ref[i], q21[i:i + 1])                   # (1, 128) att2a
        att_rows.append(jnp.concatenate([a1, a2], axis=1))        # (1, 256)
    att_cat = jnp.concatenate(att_rows, axis=0)                   # (bb, 256)

    # Stage 2 queries for ALL instances in one block-diagonal matmul:
    #   lanes   0:128 : q12 = q12c + att1a @ W12.T[c:]
    #   lanes 128:256 : q22 = q22c + att2a @ W22.T[c:]
    q_both = qc + jnp.dot(att_cat, wbd_ref[...], preferred_element_type=f32)  # (bb, 256)
    q12 = q_both[:, :P]
    q22 = q_both[:, P:]

    # Stage 2: second attentions; pack [attended1 | attended2] lane-dense per instance.
    out_rows = []
    for i in range(bb):
        attended2 = _attend(seq2_ref[i], q12[i:i + 1])            # (1, 128)
        attended1 = _attend(seq1_ref[i], q22[i:i + 1])            # (1, 128)
        out_rows.append(jnp.concatenate([attended1, attended2], axis=1))   # (1, 256)

    # Single unmasked lane-dense (bb, 256) store.
    out_ref[...] = jnp.concatenate(out_rows, axis=0)


# ------------------------------- wrappers ----------------------------------- #

def prepare_params(params):
    """One-time weight prep (transpose / pad / merge) kept OUT of the hot path."""
    W11, W12, W21, W22 = params["W11"], params["W12"], params["W21"], params["W22"]
    e1, c = W11.shape
    e2 = W21.shape[0]
    P = _LANE
    assert e1 <= P and e2 <= P, "encoding sizes must be <= 128 for this kernel"

    def pad_cols(x):
        x = jnp.asarray(x, jnp.float32)
        return jnp.pad(x, ((0, 0), (0, P - x.shape[1])))

    w11t = W11.T            # (c, e1)
    w21t = W21.T            # (c, e2)
    w12t = W12.T            # (c + e1, e2)
    w22t = W22.T            # (c + e2, e1)

    # (c, 512): four 128-lane-aligned query segments -> one MXU pass, free q_all slices.
    wq = jnp.concatenate([pad_cols(w11t), pad_cols(w21t),
                          pad_cols(w12t[:c]), pad_cols(w22t[:c])], axis=1)

    # (256, 256) block-diagonal attended-half weights:
    #   rows   0:e1    , cols   0:e2     <- W12.T[c:]  (att1a -> q12 over seq2)
    #   rows 128:128+e2, cols 128:128+e1 <- W22.T[c:]  (att2a -> q22 over seq1)
    wbd = jnp.zeros((2 * P, 2 * P), jnp.float32)
    wbd = wbd.at[:e1, :e2].set(jnp.asarray(w12t[c:], jnp.float32))
    wbd = wbd.at[P:P + e2, P:P + e1].set(jnp.asarray(w22t[c:], jnp.float32))

    return {"wq": wq, "wbd": wbd}


@jax.jit
def _sym_double_attention_batched_impl(seq1, seq2, ctx, wq, wbd):
    batch, a, e1 = seq1.shape
    _, b, e2 = seq2.shape
    c = ctx.shape[-1]
    P = _LANE
    bb = _BB
    batch_pad = _round_up(max(batch, 1), bb)
    n_steps = batch_pad // bb

    # Lane-pad the encodings to 128 and batch-pad to a multiple of bb. Zero padding is
    # benign: zero queries + zero seq rows -> uniform softmax over zeros -> zero attended.
    seq1p = jnp.zeros((batch_pad, a, P), jnp.float32).at[:batch, :, :e1].set(seq1)
    seq2p = jnp.zeros((batch_pad, b, P), jnp.float32).at[:batch, :, :e2].set(seq2)
    ctxp = jnp.zeros((batch_pad, c), jnp.float32).at[:batch].set(ctx)

    # Advisory cost estimate so XLA schedules the tiny custom call sensibly.
    flops = batch_pad * (8 * c * P + 8 * P * P + 8 * P * (a + b))
    cost = pl.CostEstimate(
        flops=int(flops),
        transcendentals=int(batch_pad * (2 * (a + b) + 4)),
        bytes_accessed=int((seq1p.size + seq2p.size + ctxp.size
                            + wq.size + wbd.size + batch_pad * 2 * P) * 4))

    kernel = functools.partial(_sym_double_attention_kernel, bb=bb)
    out = pl.pallas_call(
        kernel,
        out_shape=jax.ShapeDtypeStruct((batch_pad, 2 * P), jnp.float32),
        grid=(n_steps,),
        in_specs=[
            pl.BlockSpec((bb, a, P), lambda i: (i, 0, 0)),     # seq1 block (8 instances)
            pl.BlockSpec((bb, b, P), lambda i: (i, 0, 0)),     # seq2 block
            pl.BlockSpec((bb, c), lambda i: (i, 0)),           # ctx block: sublanes = batch
            pl.BlockSpec((c, 4 * P), lambda i: (0, 0)),        # merged ctx-query weights
            pl.BlockSpec((2 * P, 2 * P), lambda i: (0, 0)),    # block-diag attended weights
        ],
        out_specs=pl.BlockSpec((bb, 2 * P), lambda i: (i, 0)),
        compiler_params=pltpu.CompilerParams(
            dimension_semantics=("parallel",)),                # v7x: shard steps over 2 TCs
        cost_estimate=cost,
    )(seq1p, seq2p, ctxp, wq, wbd)

    return out[:batch, :e1], out[:batch, P:P + e2]


def symmetric_double_attention_batched(seq1_bae, seq2_bbe, context_bc, prep):
    """seq1: (B, a, e1), seq2: (B, b, e2), ctx: (B, c) -> ((B, e1), (B, e2))."""
    return _sym_double_attention_batched_impl(
        seq1_bae, seq2_bbe, context_bc, prep["wq"], prep["wbd"])


def symmetric_double_attention(seq1_ae, seq2_be, context_c, prep):
    """Module-equivalent single-instance forward: (a,e1),(b,e2),(c,) -> ((e1,),(e2,))."""
    a1, a2 = symmetric_double_attention_batched(
        seq1_ae[None], seq2_be[None], context_c[None], prep)
    return a1[0], a2[0]


# -------------------------- pure-JAX reference ------------------------------ #

def _attention_ref(seq_ne, W, ctx):
    q = W @ ctx                      # (e,)
    logits = seq_ne @ q              # (n,)
    alpha = jax.nn.softmax(logits)
    return alpha @ seq_ne            # (e,)


def _symmetric_double_attention_ref(seq1, seq2, ctx, p):
    # DoubleAttention(seq1, seq2, ctx): keep only attended2
    att1a = _attention_ref(seq1, p["W11"], ctx)
    attended2 = _attention_ref(seq2, p["W12"], jnp.concatenate([ctx, att1a]))
    # DoubleAttention(seq2, seq1, ctx): keep only its second output (attended1 over seq1)
    att2a = _attention_ref(seq2, p["W21"], ctx)
    attended1 = _attention_ref(seq1, p["W22"], jnp.concatenate([ctx, att2a]))
    return attended1, attended2


# ------------------------------ param init --------------------------------- #

def init_params(key, e1, e2, c):
    """Parameters for SymmetricDoubleAttention(seq1_size=e1, seq2_size=e2, context_size=c).
    Each Attention(enc, ctx) holds a bilinear weight of shape (enc, ctx)."""
    k1, k2, k3, k4 = jax.random.split(key, 4)

    def init(k, shape):
        return jax.random.normal(k, shape, jnp.float32) / math.sqrt(shape[1])

    return {
        # self.attn1 = DoubleAttention(e1, e2, c)
        "W11": init(k1, (e1, c)),        # Attention(e1, c)
        "W12": init(k2, (e2, c + e1)),   # Attention(e2, c + e1)
        # self.attn2 = DoubleAttention(e2, e1, c)
        "W21": init(k3, (e2, c)),        # Attention(e2, c)
        "W22": init(k4, (e1, c + e2)),   # Attention(e1, c + e2)
    }


# --------------------------------- main ------------------------------------ #

if __name__ == "__main__":
    A, B_LEN = 8, 16          # sequence lengths
    E1, E2, C = 32, 48, 24    # encoding sizes seq1/seq2 and context size
    BATCH = 16                # 16 instances -> 2 grid steps of 8 (both v7x TCs busy)

    # Tolerance accounts for TPU MXU default-precision (bf16-pass) matmuls plus the
    # softmax-normalization reorder / approx reciprocal; a mis-wired kernel is off by O(1).
    TOL = 2e-2

    key = jax.random.PRNGKey(0)
    kp, k1, k2, k3 = jax.random.split(key, 4)

    params = init_params(kp, E1, E2, C)
    prep = prepare_params(params)        # one-time weight transpose/pad/merge

    seq1 = jax.random.normal(k1, (BATCH, A, E1), jnp.float32)
    seq2 = jax.random.normal(k2, (BATCH, B_LEN, E2), jnp.float32)
    ctx = jax.random.normal(k3, (BATCH, C), jnp.float32)

    # Batched kernel (coarsened grid over batch blocks, "parallel" semantics).
    att1_b, att2_b = symmetric_double_attention_batched(seq1, seq2, ctx, prep)
    att1_b = jax.block_until_ready(att1_b)
    att2_b = jax.block_until_ready(att2_b)
    assert att1_b.shape == (BATCH, E1) and att2_b.shape == (BATCH, E2)

    for i in range(BATCH):
        r1, r2 = _symmetric_double_attention_ref(seq1[i], seq2[i], ctx[i], params)
        assert jnp.allclose(att1_b[i], r1, rtol=TOL, atol=TOL), f"attended1 mismatch @ {i}"
        assert jnp.allclose(att2_b[i], r2, rtol=TOL, atol=TOL), f"attended2 mismatch @ {i}"

    # Module-equivalent single-instance entry point (batch padded to one block of 8).
    s1, s2 = symmetric_double_attention(seq1[0], seq2[0], ctx[0], prep)
    s1 = jax.block_until_ready(s1)
    s2 = jax.block_until_ready(s2)
    r1, r2 = _symmetric_double_attention_ref(seq1[0], seq2[0], ctx[0], params)
    assert s1.shape == (E1,) and s2.shape == (E2,)
    assert jnp.allclose(s1, r1, rtol=TOL, atol=TOL), "unbatched attended1 mismatch"
    assert jnp.allclose(s2, r2, rtol=TOL, atol=TOL), "unbatched attended2 mismatch"

    print("KERNEL_OK")
</pallas_src>

<mosaic_0001>
module attributes {stable_mosaic.version = 11 : i64} {
  func.func @_sym_double_attention_kernel(%arg0: i32, %arg1: memref<8x8x128xf32, #tpu.memory_space<vmem>>, %arg2: memref<8x16x128xf32, #tpu.memory_space<vmem>>, %arg3: memref<8x24xf32, #tpu.memory_space<vmem>>, %arg4: memref<24x512xf32, #tpu.memory_space<vmem>>, %arg5: memref<256x256xf32, #tpu.memory_space<vmem>>, %arg6: memref<8x256xf32, #tpu.memory_space<vmem>>) attributes {dimension_semantics = [#tpu.dimension_semantics<parallel>], iteration_bounds = array<i64: 2>, scalar_prefetch = 0 : i64, scratch_operands = 0 : i64, tpu.core_type = #tpu.core_type<tc>, window_params = [{transform_indices = @transform_0, window_bounds = array<i64: 8, 8, 128>}, {transform_indices = @transform_1, window_bounds = array<i64: 8, 16, 128>}, {transform_indices = @transform_2, window_bounds = array<i64: 8, 24>}, {pipeline_mode = #tpu.pipeline_mode<synchronous>, transform_indices = @transform_3, window_bounds = array<i64: 24, 512>}, {pipeline_mode = #tpu.pipeline_mode<synchronous>, transform_indices = @transform_4, window_bounds = array<i64: 256, 256>}, {transform_indices = @transform_5, window_bounds = array<i64: 8, 256>}]} {
    %c0 = arith.constant 0 : index
    %c0_0 = arith.constant 0 : index
    %0 = vector.load %arg3[%c0, %c0_0] : memref<8x24xf32, #tpu.memory_space<vmem>>, vector<8x24xf32>
    %c0_1 = arith.constant 0 : index
    %c0_2 = arith.constant 0 : index
    %1 = vector.load %arg4[%c0_1, %c0_2] : memref<24x512xf32, #tpu.memory_space<vmem>>, vector<24x512xf32>
    %cst = arith.constant dense<0.000000e+00> : vector<8x512xf32>
    %2 = tpu.matmul %0, %1, %cst {dimension_numbers = #tpu.dot_dimension_numbers<[1], [0], [0], [1], [0, 0, 1, 1], [], []>} : vector<8x24xf32>, vector<24x512xf32>, vector<8x512xf32> -> vector<8x512xf32>
    %3 = vector.extract_strided_slice %2 {offsets = [0, 0], sizes = [8, 128], strides = [1, 1]} : vector<8x512xf32> to vector<8x128xf32>
    %4 = vector.extract_strided_slice %2 {offsets = [0, 128], sizes = [8, 128], strides = [1, 1]} : vector<8x512xf32> to vector<8x128xf32>
    %5 = vector.extract_strided_slice %2 {offsets = [0, 256], sizes = [8, 256], strides = [1, 1]} : vector<8x512xf32> to vector<8x256xf32>
    %c0_3 = arith.constant 0 : index
    %c0_4 = arith.constant 0 : index
    %c0_5 = arith.constant 0 : index
    %6 = vector.load %arg1[%c0_3, %c0_4, %c0_5] : memref<8x8x128xf32, #tpu.memory_space<vmem>>, vector<1x8x128xf32>
    %7 = vector.shape_cast %6 : vector<1x8x128xf32> to vector<8x128xf32>
    %8 = vector.extract_strided_slice %3 {offsets = [0, 0], sizes = [1, 128], strides = [1, 1]} : vector<8x128xf32> to vector<1x128xf32>
    %cst_6 = arith.constant dense<0.000000e+00> : vector<1x8xf32>
    %9 = tpu.matmul %8, %7, %cst_6 {dimension_numbers = #tpu.dot_dimension_numbers<[1], [1], [0], [0], [0, 0, 1, 0], [], []>} : vector<1x128xf32>, vector<8x128xf32>, vector<1x8xf32> -> vector<1x8xf32>
    %cst_7 = arith.constant dense<0xFF800000> : vector<1xf32>
    %10 = vector.multi_reduction <maximumf>, %9, %cst_7 [1] : vector<1x8xf32> to vector<1xf32>
    %11 = vector.shape_cast %10 : vector<1xf32> to vector<1x1xf32>
    %12 = vector.broadcast %11 : vector<1x1xf32> to vector<1x8xf32>
    %13 = arith.subf %9, %12 : vector<1x8xf32>
    %14 = math.exp %13 : vector<1x8xf32>
    %cst_8 = arith.constant dense<0.000000e+00> : vector<1xf32>
    %15 = vector.multi_reduction <add>, %14, %cst_8 [1] : vector<1x8xf32> to vector<1xf32>
    %16 = vector.shape_cast %15 : vector<1xf32> to vector<1x1xf32>
    %cst_9 = arith.constant dense<0.000000e+00> : vector<1x128xf32>
    %17 = tpu.matmul %14, %7, %cst_9 {dimension_numbers = #tpu.dot_dimension_numbers<[1], [0], [0], [1], [0, 0, 1, 1], [], []>} : vector<1x8xf32>, vector<8x128xf32>, vector<1x128xf32> -> vector<1x128xf32>
    %18 = tpu.reciprocal %16 {approx = true} : vector<1x1xf32> -> vector<1x1xf32>
    %19 = vector.broadcast %18 : vector<1x1xf32> to vector<1x128xf32>
    %20 = arith.mulf %17, %19 : vector<1x128xf32>
    %c0_10 = arith.constant 0 : index
    %c0_11 = arith.constant 0 : index
    %c0_12 = arith.constant 0 : index
    %21 = vector.load %arg2[%c0_10, %c0_11, %c0_12] : memref<8x16x128xf32, #tpu.memory_space<vmem>>, vector<1x16x128xf32>
    %22 = vector.shape_cast %21 : vector<1x16x128xf32> to vector<16x128xf32>
    %23 = vector.extract_strided_slice %4 {offsets = [0, 0], sizes = [1, 128], strides = [1, 1]} : vector<8x128xf32> to vector<1x128xf32>
    %cst_13 = arith.constant dense<0.000000e+00> : vector<1x16xf32>
    %24 = tpu.matmul %23, %22, %cst_13 {dimension_numbers = #tpu.dot_dimension_numbers<[1], [1], [0], [0], [0, 0, 1, 0], [], []>} : vector<1x128xf32>, vector<16x128xf32>, vector<1x16xf32> -> vector<1x16xf32>
    %cst_14 = arith.constant dense<0xFF800000> : vector<1xf32>
    %25 = vector.multi_reduction <maximumf>, %24, %cst_14 [1] : vector<1x16xf32> to vector<1xf32>
    %26 = vector.shape_cast %25 : vector<1xf32> to vector<1x1xf32>
    %27 = vector.broadcast %26 : vector<1x1xf32> to vector<1x16xf32>
    %28 = arith.subf %24, %27 : vector<1x16xf32>
    %29 = math.exp %28 : vector<1x16xf32>
    %cst_15 = arith.constant dense<0.000000e+00> : vector<1xf32>
    %30 = vector.multi_reduction <add>, %29, %cst_15 [1] : vector<1x16xf32> to vector<1xf32>
    %31 = vector.shape_cast %30 : vector<1xf32> to vector<1x1xf32>
    %cst_16 = arith.constant dense<0.000000e+00> : vector<1x128xf32>
    %32 = tpu.matmul %29, %22, %cst_16 {dimension_numbers = #tpu.dot_dimension_numbers<[1], [0], [0], [1], [0, 0, 1, 1], [], []>} : vector<1x16xf32>, vector<16x128xf32>, vector<1x128xf32> -> vector<1x128xf32>
    %33 = tpu.reciprocal %31 {approx = true} : vector<1x1xf32> -> vector<1x1xf32>
    %34 = vector.broadcast %33 : vector<1x1xf32> to vector<1x128xf32>
    %35 = arith.mulf %32, %34 : vector<1x128xf32>
    %36 = tpu.concatenate %20, %35 in 1 : vector<1x128xf32>, vector<1x128xf32> -> vector<1x256xf32>
    %c1 = arith.constant 1 : index
    %c0_17 = arith.constant 0 : index
    %c0_18 = arith.constant 0 : index
    %37 = vector.load %arg1[%c1, %c0_17, %c0_18] : memref<8x8x128xf32, #tpu.memory_space<vmem>>, vector<1x8x128xf32>
    %38 = vector.shape_cast %37 : vector<1x8x128xf32> to vector<8x128xf32>
    %39 = vector.extract_strided_slice %3 {offsets = [1, 0], sizes = [1, 128], strides = [1, 1]} : vector<8x128xf32> to vector<1x128xf32>
    %cst_19 = arith.constant dense<0.000000e+00> : vector<1x8xf32>
    %40 = tpu.matmul %39, %38, %cst_19 {dimension_numbers = #tpu.dot_dimension_numbers<[1], [1], [0], [0], [0, 0, 1, 0], [], []>} : vector<1x128xf32>, vector<8x128xf32>, vector<1x8xf32> -> vector<1x8xf32>
    %cst_20 = arith.constant dense<0xFF800000> : vector<1xf32>
    %41 = vector.multi_reduction <maximumf>, %40, %cst_20 [1] : vector<1x8xf32> to vector<1xf32>
    %42 = vector.shape_cast %41 : vector<1xf32> to vector<1x1xf32>
    %43 = vector.broadcast %42 : vector<1x1xf32> to vector<1x8xf32>
    %44 = arith.subf %40, %43 : vector<1x8xf32>
    %45 = math.exp %44 : vector<1x8xf32>
    %cst_21 = arith.constant dense<0.000000e+00> : vector<1xf32>
    %46 = vector.multi_reduction <add>, %45, %cst_21 [1] : vector<1x8xf32> to vector<1xf32>
    %47 = vector.shape_cast %46 : vector<1xf32> to vector<1x1xf32>
    %cst_22 = arith.constant dense<0.000000e+00> : vector<1x128xf32>
    %48 = tpu.matmul %45, %38, %cst_22 {dimension_numbers = #tpu.dot_dimension_numbers<[1], [0], [0], [1], [0, 0, 1, 1], [], []>} : vector<1x8xf32>, vector<8x128xf32>, vector<1x128xf32> -> vector<1x128xf32>
    %49 = tpu.reciprocal %47 {approx = true} : vector<1x1xf32> -> vector<1x1xf32>
    %50 = vector.broadcast %49 : vector<1x1xf32> to vector<1x128xf32>
    %51 = arith.mulf %48, %50 : vector<1x128xf32>
    %c1_23 = arith.constant 1 : index
    %c0_24 = arith.constant 0 : index
    %c0_25 = arith.constant 0 : index
    %52 = vector.load %arg2[%c1_23, %c0_24, %c0_25] : memref<8x16x128xf32, #tpu.memory_space<vmem>>, vector<1x16x128xf32>
    %53 = vector.shape_cast %52 : vector<1x16x128xf32> to vector<16x128xf32>
    %54 = vector.extract_strided_slice %4 {offsets = [1, 0], sizes = [1, 128], strides = [1, 1]} : vector<8x128xf32> to vector<1x128xf32>
    %cst_26 = arith.constant dense<0.000000e+00> : vector<1x16xf32>
    %55 = tpu.matmul %54, %53, %cst_26 {dimension_numbers = #tpu.dot_dimension_numbers<[1], [1], [0], [0], [0, 0, 1, 0], [], []>} : vector<1x128xf32>, vector<16x128xf32>, vector<1x16xf32> -> vector<1x16xf32>
    %cst_27 = arith.constant dense<0xFF800000> : vector<1xf32>
    %56 = vector.multi_reduction <maximumf>, %55, %cst_27 [1] : vector<1x16xf32> to vector<1xf32>
    %57 = vector.shape_cast %56 : vector<1xf32> to vector<1x1xf32>
    %58 = vector.broadcast %57 : vector<1x1xf32> to vector<1x16xf32>
    %59 = arith.subf %55, %58 : vector<1x16xf32>
    %60 = math.exp %59 : vector<1x16xf32>
    %cst_28 = arith.constant dense<0.000000e+00> : vector<1xf32>
    %61 = vector.multi_reduction <add>, %60, %cst_28 [1] : vector<1x16xf32> to vector<1xf32>
    %62 = vector.shape_cast %61 : vector<1xf32> to vector<1x1xf32>
    %cst_29 = arith.constant dense<0.000000e+00> : vector<1x128xf32>
    %63 = tpu.matmul %60, %53, %cst_29 {dimension_numbers = #tpu.dot_dimension_numbers<[1], [0], [0], [1], [0, 0, 1, 1], [], []>} : vector<1x16xf32>, vector<16x128xf32>, vector<1x128xf32> -> vector<1x128xf32>
    %64 = tpu.reciprocal %62 {approx = true} : vector<1x1xf32> -> vector<1x1xf32>
    %65 = vector.broadcast %64 : vector<1x1xf32> to vector<1x128xf32>
    %66 = arith.mulf %63, %65 : vector<1x128xf32>
    %67 = tpu.concatenate %51, %66 in 1 : vector<1x128xf32>, vector<1x128xf32> -> vector<1x256xf32>
    %c2 = arith.constant 2 : index
    %c0_30 = arith.constant 0 : index
    %c0_31 = arith.constant 0 : index
    %68 = vector.load %arg1[%c2, %c0_30, %c0_31] : memref<8x8x128xf32, #tpu.memory_space<vmem>>, vector<1x8x128xf32>
    %69 = vector.shape_cast %68 : vector<1x8x128xf32> to vector<8x128xf32>
    %70 = vector.extract_strided_slice %3 {offsets = [2, 0], sizes = [1, 128], strides = [1, 1]} : vector<8x128xf32> to vector<1x128xf32>
    %cst_32 = arith.constant dense<0.000000e+00> : vector<1x8xf32>
    %71 = tpu.matmul %70, %69, %cst_32 {dimension_numbers = #tpu.dot_dimension_numbers<[1], [1], [0], [0], [0, 0, 1, 0], [], []>} : vector<1x128xf32>, vector<8x128xf32>, vector<1x8xf32> -> vector<1x8xf32>
    %cst_33 = arith.constant dense<0xFF800000> : vector<1xf32>
    %72 = vector.multi_reduction <maximumf>, %71, %cst_33 [1] : vector<1x8xf32> to vector<1xf32>
    %73 = vector.shape_cast %72 : vector<1xf32> to vector<1x1xf32>
    %74 = vector.broadcast %73 : vector<1x1xf32> to vector<1x8xf32>
    %75 = arith.subf %71, %74 : vector<1x8xf32>
    %76 = math.exp %75 : vector<1x8xf32>
    %cst_34 = arith.constant dense<0.000000e+00> : vector<1xf32>
    %77 = vector.multi_reduction <add>, %76, %cst_34 [1] : vector<1x8xf32> to vector<1xf32>
    %78 = vector.shape_cast %77 : vector<1xf32> to vector<1x1xf32>
    %cst_35 = arith.constant dense<0.000000e+00> : vector<1x128xf32>
    %79 = tpu.matmul %76, %69, %cst_35 {dimension_numbers = #tpu.dot_dimension_numbers<[1], [0], [0], [1], [0, 0, 1, 1], [], []>} : vector<1x8xf32>, vector<8x128xf32>, vector<1x128xf32> -> vector<1x128xf32>
    %80 = tpu.reciprocal %78 {approx = true} : vector<1x1xf32> -> vector<1x1xf32>
    %81 = vector.broadcast %80 : vector<1x1xf32> to vector<1x128xf32>
    %82 = arith.mulf %79, %81 : vector<1x128xf32>
    %c2_36 = arith.constant 2 : index
    %c0_37 = arith.constant 0 : index
    %c0_38 = arith.constant 0 : index
    %83 = vector.load %arg2[%c2_36, %c0_37, %c0_38] : memref<8x16x128xf32, #tpu.memory_space<vmem>>, vector<1x16x128xf32>
    %84 = vector.shape_cast %83 : vector<1x16x128xf32> to vector<16x128xf32>
    %85 = vector.extract_strided_slice %4 {offsets = [2, 0], sizes = [1, 128], strides = [1, 1]} : vector<8x128xf32> to vector<1x128xf32>
    %cst_39 = arith.constant dense<0.000000e+00> : vector<1x16xf32>
    %86 = tpu.matmul %85, %84, %cst_39 {dimension_numbers = #tpu.dot_dimension_numbers<[1], [1], [0], [0], [0, 0, 1, 0], [], []>} : vector<1x128xf32>, vector<16x128xf32>, vector<1x16xf32> -> vector<1x16xf32>
    %cst_40 = arith.constant dense<0xFF800000> : vector<1xf32>
    %87 = vector.multi_reduction <maximumf>, %86, %cst_40 [1] : vector<1x16xf32> to vector<1xf32>
    %88 = vector.shape_cast %87 : vector<1xf32> to vector<1x1xf32>
    %89 = vector.broadcast %88 : vector<1x1xf32> to vector<1x16xf32>
    %90 = arith.subf %86, %89 : vector<1x16xf32>
    %91 = math.exp %90 : vector<1x16xf32>
    %cst_41 = arith.constant dense<0.000000e+00> : vector<1xf32>
    %92 = vector.multi_reduction <add>, %91, %cst_41 [1] : vector<1x16xf32> to vector<1xf32>
    %93 = vector.shape_cast %92 : vector<1xf32> to vector<1x1xf32>
    %cst_42 = arith.constant dense<0.000000e+00> : vector<1x128xf32>
    %94 = tpu.matmul %91, %84, %cst_42 {dimension_numbers = #tpu.dot_dimension_numbers<[1], [0], [0], [1], [0, 0, 1, 1], [], []>} : vector<1x16xf32>, vector<16x128xf32>, vector<1x128xf32> -> vector<1x128xf32>
    %95 = tpu.reciprocal %93 {approx = true} : vector<1x1xf32> -> vector<1x1xf32>
    %96 = vector.broadcast %95 : vector<1x1xf32> to vector<1x128xf32>
    %97 = arith.mulf %94, %96 : vector<1x128xf32>
    %98 = tpu.concatenate %82, %97 in 1 : vector<1x128xf32>, vector<1x128xf32> -> vector<1x256xf32>
    %c3 = arith.constant 3 : index
    %c0_43 = arith.constant 0 : index
    %c0_44 = arith.constant 0 : index
    %99 = vector.load %arg1[%c3, %c0_43, %c0_44] : memref<8x8x128xf32, #tpu.memory_space<vmem>>, vector<1x8x128xf32>
    %100 = vector.shape_cast %99 : vector<1x8x128xf32> to vector<8x128xf32>
    %101 = vector.extract_strided_slice %3 {offsets = [3, 0], sizes = [1, 128], strides = [1, 1]} : vector<8x128xf32> to vector<1x128xf32>
    %cst_45 = arith.constant dense<0.000000e+00> : vector<1x8xf32>
    %102 = tpu.matmul %101, %100, %cst_45 {dimension_numbers = #tpu.dot_dimension_numbers<[1], [1], [0], [0], [0, 0, 1, 0], [], []>} : vector<1x128xf32>, vector<8x128xf32>, vector<1x8xf32> -> vector<1x8xf32>
    %cst_46 = arith.constant dense<0xFF800000> : vector<1xf32>
    %103 = vector.multi_reduction <maximumf>, %102, %cst_46 [1] : vector<1x8xf32> to vector<1xf32>
    %104 = vector.shape_cast %103 : vector<1xf32> to vector<1x1xf32>
    %105 = vector.broadcast %104 : vector<1x1xf32> to vector<1x8xf32>
    %106 = arith.subf %102, %105 : vector<1x8xf32>
    %107 = math.exp %106 : vector<1x8xf32>
    %cst_47 = arith.constant dense<0.000000e+00> : vector<1xf32>
    %108 = vector.multi_reduction <add>, %107, %cst_47 [1] : vector<1x8xf32> to vector<1xf32>
    %109 = vector.shape_cast %108 : vector<1xf32> to vector<1x1xf32>
    %cst_48 = arith.constant dense<0.000000e+00> : vector<1x128xf32>
    %110 = tpu.matmul %107, %100, %cst_48 {dimension_numbers = #tpu.dot_dimension_numbers<[1], [0], [0], [1], [0, 0, 1, 1], [], []>} : vector<1x8xf32>, vector<8x128xf32>, vector<1x128xf32> -> vector<1x128xf32>
    %111 = tpu.reciprocal %109 {approx = true} : vector<1x1xf32> -> vector<1x1xf32>
    %112 = vector.broadcast %111 : vector<1x1xf32> to vector<1x128xf32>
    %113 = arith.mulf %110, %112 : vector<1x128xf32>
    %c3_49 = arith.constant 3 : index
    %c0_50 = arith.constant 0 : index
    %c0_51 = arith.constant 0 : index
    %114 = vector.load %arg2[%c3_49, %c0_50, %c0_51] : memref<8x16x128xf32, #tpu.memory_space<vmem>>, vector<1x16x128xf32>
    %115 = vector.shape_cast %114 : vector<1x16x128xf32> to vector<16x128xf32>
    %116 = vector.extract_strided_slice %4 {offsets = [3, 0], sizes = [1, 128], strides = [1, 1]} : vector<8x128xf32> to vector<1x128xf32>
    %cst_52 = arith.constant dense<0.000000e+00> : vector<1x16xf32>
    %117 = tpu.matmul %116, %115, %cst_52 {dimension_numbers = #tpu.dot_dimension_numbers<[1], [1], [0], [0], [0, 0, 1, 0], [], []>} : vector<1x128xf32>, vector<16x128xf32>, vector<1x16xf32> -> vector<1x16xf32>
    %cst_53 = arith.constant dense<0xFF800000> : vector<1xf32>
    %118 = vector.multi_reduction <maximumf>, %117, %cst_53 [1] : vector<1x16xf32> to vector<1xf32>
    %119 = vector.shape_cast %118 : vector<1xf32> to vector<1x1xf32>
    %120 = vector.broadcast %119 : vector<1x1xf32> to vector<1x16xf32>
    %121 = arith.subf %117, %120 : vector<1x16xf32>
    %122 = math.exp %121 : vector<1x16xf32>
    %cst_54 = arith.constant dense<0.000000e+00> : vector<1xf32>
    %123 = vector.multi_reduction <add>, %122, %cst_54 [1] : vector<1x16xf32> to vector<1xf32>
    %124 = vector.shape_cast %123 : vector<1xf32> to vector<1x1xf32>
    %cst_55 = arith.constant dense<0.000000e+00> : vector<1x128xf32>
    %125 = tpu.matmul %122, %115, %cst_55 {dimension_numbers = #tpu.dot_dimension_numbers<[1], [0], [0], [1], [0, 0, 1, 1], [], []>} : vector<1x16xf32>, vector<16x128xf32>, vector<1x128xf32> -> vector<1x128xf32>
    %126 = tpu.reciprocal %124 {approx = true} : vector<1x1xf32> -> vector<1x1xf32>
    %127 = vector.broadcast %126 : vector<1x1xf32> to vector<1x128xf32>
    %128 = arith.mulf %125, %127 : vector<1x128xf32>
    %129 = tpu.concatenate %113, %128 in 1 : vector<1x128xf32>, vector<1x128xf32> -> vector<1x256xf32>
    %c4 = arith.constant 4 : index
    %c0_56 = arith.constant 0 : index
    %c0_57 = arith.constant 0 : index
    %130 = vector.load %arg1[%c4, %c0_56, %c0_57] : memref<8x8x128xf32, #tpu.memory_space<vmem>>, vector<1x8x128xf32>
    %131 = vector.shape_cast %130 : vector<1x8x128xf32> to vector<8x128xf32>
    %132 = vector.extract_strided_slice %3 {offsets = [4, 0], sizes = [1, 128], strides = [1, 1]} : vector<8x128xf32> to vector<1x128xf32>
    %cst_58 = arith.constant dense<0.000000e+00> : vector<1x8xf32>
    %133 = tpu.matmul %132, %131, %cst_58 {dimension_numbers = #tpu.dot_dimension_numbers<[1], [1], [0], [0], [0, 0, 1, 0], [], []>} : vector<1x128xf32>, vector<8x128xf32>, vector<1x8xf32> -> vector<1x8xf32>
    %cst_59 = arith.constant dense<0xFF800000> : vector<1xf32>
    %134 = vector.multi_reduction <maximumf>, %133, %cst_59 [1] : vector<1x8xf32> to vector<1xf32>
    %135 = vector.shape_cast %134 : vector<1xf32> to vector<1x1xf32>
    %136 = vector.broadcast %135 : vector<1x1xf32> to vector<1x8xf32>
    %137 = arith.subf %133, %136 : vector<1x8xf32>
    %138 = math.exp %137 : vector<1x8xf32>
    %cst_60 = arith.constant dense<0.000000e+00> : vector<1xf32>
    %139 = vector.multi_reduction <add>, %138, %cst_60 [1] : vector<1x8xf32> to vector<1xf32>
    %140 = vector.shape_cast %139 : vector<1xf32> to vector<1x1xf32>
    %cst_61 = arith.constant dense<0.000000e+00> : vector<1x128xf32>
    %141 = tpu.matmul %138, %131, %cst_61 {dimension_numbers = #tpu.dot_dimension_numbers<[1], [0], [0], [1], [0, 0, 1, 1], [], []>} : vector<1x8xf32>, vector<8x128xf32>, vector<1x128xf32> -> vector<1x128xf32>
    %142 = tpu.reciprocal %140 {approx = true} : vector<1x1xf32> -> vector<1x1xf32>
    %143 = vector.broadcast %142 : vector<1x1xf32> to vector<1x128xf32>
    %144 = arith.mulf %141, %143 : vector<1x128xf32>
    %c4_62 = arith.constant 4 : index
    %c0_63 = arith.constant 0 : index
    %c0_64 = arith.constant 0 : index
    %145 = vector.load %arg2[%c4_62, %c0_63, %c0_64] : memref<8x16x128xf32, #tpu.memory_space<vmem>>, vector<1x16x128xf32>
    %146 = vector.shape_cast %145 : vector<1x16x128xf32> to vector<16x128xf32>
    %147 = vector.extract_strided_slice %4 {offsets = [4, 0], sizes = [1, 128], strides = [1, 1]} : vector<8x128xf32> to vector<1x128xf32>
    %cst_65 = arith.constant dense<0.000000e+00> : vector<1x16xf32>
    %148 = tpu.matmul %147, %146, %cst_65 {dimension_numbers = #tpu.dot_dimension_numbers<[1], [1], [0], [0], [0, 0, 1, 0], [], []>} : vector<1x128xf32>, vector<16x128xf32>, vector<1x16xf32> -> vector<1x16xf32>
    %cst_66 = arith.constant dense<0xFF800000> : vector<1xf32>
    %149 = vector.multi_reduction <maximumf>, %148, %cst_66 [1] : vector<1x16xf32> to vector<1xf32>
    %150 = vector.shape_cast %149 : vector<1xf32> to vector<1x1xf32>
    %151 = vector.broadcast %150 : vector<1x1xf32> to vector<1x16xf32>
    %152 = arith.subf %148, %151 : vector<1x16xf32>
    %153 = math.exp %152 : vector<1x16xf32>
    %cst_67 = arith.constant dense<0.000000e+00> : vector<1xf32>
    %154 = vector.multi_reduction <add>, %153, %cst_67 [1] : vector<1x16xf32> to vector<1xf32>
    %155 = vector.shape_cast %154 : vector<1xf32> to vector<1x1xf32>
    %cst_68 = arith.constant dense<0.000000e+00> : vector<1x128xf32>
    %156 = tpu.matmul %153, %146, %cst_68 {dimension_numbers = #tpu.dot_dimension_numbers<[1], [0], [0], [1], [0, 0, 1, 1], [], []>} : vector<1x16xf32>, vector<16x128xf32>, vector<1x128xf32> -> vector<1x128xf32>
    %157 = tpu.reciprocal %155 {approx = true} : vector<1x1xf32> -> vector<1x1xf32>
    %158 = vector.broadcast %157 : vector<1x1xf32> to vector<1x128xf32>
    %159 = arith.mulf %156, %158 : vector<1x128xf32>
    %160 = tpu.concatenate %144, %159 in 1 : vector<1x128xf32>, vector<1x128xf32> -> vector<1x256xf32>
    %c5 = arith.constant 5 : index
    %c0_69 = arith.constant 0 : index
    %c0_70 = arith.constant 0 : index
    %161 = vector.load %arg1[%c5, %c0_69, %c0_70] : memref<8x8x128xf32, #tpu.memory_space<vmem>>, vector<1x8x128xf32>
    %162 = vector.shape_cast %161 : vector<1x8x128xf32> to vector<8x128xf32>
    %163 = vector.extract_strided_slice %3 {offsets = [5, 0], sizes = [1, 128], strides = [1, 1]} : vector<8x128xf32> to vector<1x128xf32>
    %cst_71 = arith.constant dense<0.000000e+00> : vector<1x8xf32>
    %164 = tpu.matmul %163, %162, %cst_71 {dimension_numbers = #tpu.dot_dimension_numbers<[1], [1], [0], [0], [0, 0, 1, 0], [], []>} : vector<1x128xf32>, vector<8x128xf32>, vector<1x8xf32> -> vector<1x8xf32>
    %cst_72 = arith.constant dense<0xFF800000> : vector<1xf32>
    %165 = vector.multi_reduction <maximumf>, %164, %cst_72 [1] : vector<1x8xf32> to vector<1xf32>
    %166 = vector.shape_cast %165 : vector<1xf32> to vector<1x1xf32>
    %167 = vector.broadcast %166 : vector<1x1xf32> to vector<1x8xf32>
    %168 = arith.subf %164, %167 : vector<1x8xf32>
    %169 = math.exp %168 : vector<1x8xf32>
    %cst_73 = arith.constant dense<0.000000e+00> : vector<1xf32>
    %170 = vector.multi_reduction <add>, %169, %cst_73 [1] : vector<1x8xf32> to vector<1xf32>
    %171 = vector.shape_cast %170 : vector<1xf32> to vector<1x1xf32>
    %cst_74 = arith.constant dense<0.000000e+00> : vector<1x128xf32>
    %172 = tpu.matmul %169, %162, %cst_74 {dimension_numbers = #tpu.dot_dimension_numbers<[1], [0], [0], [1], [0, 0, 1, 1], [], []>} : vector<1x8xf32>, vector<8x128xf32>, vector<1x128xf32> -> vector<1x128xf32>
    %173 = tpu.reciprocal %171 {approx = true} : vector<1x1xf32> -> vector<1x1xf32>
    %174 = vector.broadcast %173 : vector<1x1xf32> to vector<1x128xf32>
    %175 = arith.mulf %172, %174 : vector<1x128xf32>
    %c5_75 = arith.constant 5 : index
    %c0_76 = arith.constant 0 : index
    %c0_77 = arith.constant 0 : index
    %176 = vector.load %arg2[%c5_75, %c0_76, %c0_77] : memref<8x16x128xf32, #tpu.memory_space<vmem>>, vector<1x16x128xf32>
    %177 = vector.shape_cast %176 : vector<1x16x128xf32> to vector<16x128xf32>
    %178 = vector.extract_strided_slice %4 {offsets = [5, 0], sizes = [1, 128], strides = [1, 1]} : vector<8x128xf32> to vector<1x128xf32>
    %cst_78 = arith.constant dense<0.000000e+00> : vector<1x16xf32>
    %179 = tpu.matmul %178, %177, %cst_78 {dimension_numbers = #tpu.dot_dimension_numbers<[1], [1], [0], [0], [0, 0, 1, 0], [], []>} : vector<1x128xf32>, vector<16x128xf32>, vector<1x16xf32> -> vector<1x16xf32>
    %cst_79 = arith.constant dense<0xFF800000> : vector<1xf32>
    %180 = vector.multi_reduction <maximumf>, %179, %cst_79 [1] : vector<1x16xf32> to vector<1xf32>
    %181 = vector.shape_cast %180 : vector<1xf32> to vector<1x1xf32>
    %182 = vector.broadcast %181 : vector<1x1xf32> to vector<1x16xf32>
    %183 = arith.subf %179, %182 : vector<1x16xf32>
    %184 = math.exp %183 : vector<1x16xf32>
    %cst_80 = arith.constant dense<0.000000e+00> : vector<1xf32>
    %185 = vector.multi_reduction <add>, %184, %cst_80 [1] : vector<1x16xf32> to vector<1xf32>
    %186 = vector.shape_cast %185 : vector<1xf32> to vector<1x1xf32>
    %cst_81 = arith.constant dense<0.000000e+00> : vector<1x128xf32>
    %187 = tpu.matmul %184, %177, %cst_81 {dimension_numbers = #tpu.dot_dimension_numbers<[1], [0], [0], [1], [0, 0, 1, 1], [], []>} : vector<1x16xf32>, vector<16x128xf32>, vector<1x128xf32> -> vector<1x128xf32>
    %188 = tpu.reciprocal %186 {approx = true} : vector<1x1xf32> -> vector<1x1xf32>
    %189 = vector.broadcast %188 : vector<1x1xf32> to vector<1x128xf32>
    %190 = arith.mulf %187, %189 : vector<1x128xf32>
    %191 = tpu.concatenate %175, %190 in 1 : vector<1x128xf32>, vector<1x128xf32> -> vector<1x256xf32>
    %c6 = arith.constant 6 : index
    %c0_82 = arith.constant 0 : index
    %c0_83 = arith.constant 0 : index
    %192 = vector.load %arg1[%c6, %c0_82, %c0_83] : memref<8x8x128xf32, #tpu.memory_space<vmem>>, vector<1x8x128xf32>
    %193 = vector.shape_cast %192 : vector<1x8x128xf32> to vector<8x128xf32>
    %194 = vector.extract_strided_slice %3 {offsets = [6, 0], sizes = [1, 128], strides = [1, 1]} : vector<8x128xf32> to vector<1x128xf32>
    %cst_84 = arith.constant dense<0.000000e+00> : vector<1x8xf32>
    %195 = tpu.matmul %194, %193, %cst_84 {dimension_numbers = #tpu.dot_dimension_numbers<[1], [1], [0], [0], [0, 0, 1, 0], [], []>} : vector<1x128xf32>, vector<8x128xf32>, vector<1x8xf32> -> vector<1x8xf32>
    %cst_85 = arith.constant dense<0xFF800000> : vector<1xf32>
    %196 = vector.multi_reduction <maximumf>, %195, %cst_85 [1] : vector<1x8xf32> to vector<1xf32>
    %197 = vector.shape_cast %196 : vector<1xf32> to vector<1x1xf32>
    %198 = vector.broadcast %197 : vector<1x1xf32> to vector<1x8xf32>
    %199 = arith.subf %195, %198 : vector<1x8xf32>
    %200 = math.exp %199 : vector<1x8xf32>
    %cst_86 = arith.constant dense<0.000000e+00> : vector<1xf32>
    %201 = vector.multi_reduction <add>, %200, %cst_86 [1] : vector<1x8xf32> to vector<1xf32>
    %202 = vector.shape_cast %201 : vector<1xf32> to vector<1x1xf32>
    %cst_87 = arith.constant dense<0.000000e+00> : vector<1x128xf32>
    %203 = tpu.matmul %200, %193, %cst_87 {dimension_numbers = #tpu.dot_dimension_numbers<[1], [0], [0], [1], [0, 0, 1, 1], [], []>} : vector<1x8xf32>, vector<8x128xf32>, vector<1x128xf32> -> vector<1x128xf32>
    %204 = tpu.reciprocal %202 {approx = true} : vector<1x1xf32> -> vector<1x1xf32>
    %205 = vector.broadcast %204 : vector<1x1xf32> to vector<1x128xf32>
    %206 = arith.mulf %203, %205 : vector<1x128xf32>
    %c6_88 = arith.constant 6 : index
    %c0_89 = arith.constant 0 : index
    %c0_90 = arith.constant 0 : index
    %207 = vector.load %arg2[%c6_88, %c0_89, %c0_90] : memref<8x16x128xf32, #tpu.memory_space<vmem>>, vector<1x16x128xf32>
    %208 = vector.shape_cast %207 : vector<1x16x128xf32> to vector<16x128xf32>
    %209 = vector.extract_strided_slice %4 {offsets = [6, 0], sizes = [1, 128], strides = [1, 1]} : vector<8x128xf32> to vector<1x128xf32>
    %cst_91 = arith.constant dense<0.000000e+00> : vector<1x16xf32>
    %210 = tpu.matmul %209, %208, %cst_91 {dimension_numbers = #tpu.dot_dimension_numbers<[1], [1], [0], [0], [0, 0, 1, 0], [], []>} : vector<1x128xf32>, vector<16x128xf32>, vector<1x16xf32> -> vector<1x16xf32>
    %cst_92 = arith.constant dense<0xFF800000> : vector<1xf32>
    %211 = vector.multi_reduction <maximumf>, %210, %cst_92 [1] : vector<1x16xf32> to vector<1xf32>
    %212 = vector.shape_cast %211 : vector<1xf32> to vector<1x1xf32>
    %213 = vector.broadcast %212 : vector<1x1xf32> to vector<1x16xf32>
    %214 = arith.subf %210, %213 : vector<1x16xf32>
    %215 = math.exp %214 : vector<1x16xf32>
    %cst_93 = arith.constant dense<0.000000e+00> : vector<1xf32>
    %216 = vector.multi_reduction <add>, %215, %cst_93 [1] : vector<1x16xf32> to vector<1xf32>
    %217 = vector.shape_cast %216 : vector<1xf32> to vector<1x1xf32>
    %cst_94 = arith.constant dense<0.000000e+00> : vector<1x128xf32>
    %218 = tpu.matmul %215, %208, %cst_94 {dimension_numbers = #tpu.dot_dimension_numbers<[1], [0], [0], [1], [0, 0, 1, 1], [], []>} : vector<1x16xf32>, vector<16x128xf32>, vector<1x128xf32> -> vector<1x128xf32>
    %219 = tpu.reciprocal %217 {approx = true} : vector<1x1xf32> -> vector<1x1xf32>
    %220 = vector.broadcast %219 : vector<1x1xf32> to vector<1x128xf32>
    %221 = arith.mulf %218, %220 : vector<1x128xf32>
    %222 = tpu.concatenate %206, %221 in 1 : vector<1x128xf32>, vector<1x128xf32> -> vector<1x256xf32>
    %c7 = arith.constant 7 : index
    %c0_95 = arith.constant 0 : index
    %c0_96 = arith.constant 0 : index
    %223 = vector.load %arg1[%c7, %c0_95, %c0_96] : memref<8x8x128xf32, #tpu.memory_space<vmem>>, vector<1x8x128xf32>
    %224 = vector.shape_cast %223 : vector<1x8x128xf32> to vector<8x128xf32>
    %225 = vector.extract_strided_slice %3 {offsets = [7, 0], sizes = [1, 128], strides = [1, 1]} : vector<8x128xf32> to vector<1x128xf32>
    %cst_97 = arith.constant dense<0.000000e+00> : vector<1x8xf32>
    %226 = tpu.matmul %225, %224, %cst_97 {dimension_numbers = #tpu.dot_dimension_numbers<[1], [1], [0], [0], [0, 0, 1, 0], [], []>} : vector<1x128xf32>, vector<8x128xf32>, vector<1x8xf32> -> vector<1x8xf32>
    %cst_98 = arith.constant dense<0xFF800000> : vector<1xf32>
    %227 = vector.multi_reduction <maximumf>, %226, %cst_98 [1] : vector<1x8xf32> to vector<1xf32>
    %228 = vector.shape_cast %227 : vector<1xf32> to vector<1x1xf32>
    %229 = vector.broadcast %228 : vector<1x1xf32> to vector<1x8xf32>
    %230 = arith.subf %226, %229 : vector<1x8xf32>
    %231 = math.exp %230 : vector<1x8xf32>
    %cst_99 = arith.constant dense<0.000000e+00> : vector<1xf32>
    %232 = vector.multi_reduction <add>, %231, %cst_99 [1] : vector<1x8xf32> to vector<1xf32>
    %233 = vector.shape_cast %232 : vector<1xf32> to vector<1x1xf32>
    %cst_100 = arith.constant dense<0.000000e+00> : vector<1x128xf32>
    %234 = tpu.matmul %231, %224, %cst_100 {dimension_numbers = #tpu.dot_dimension_numbers<[1], [0], [0], [1], [0, 0, 1, 1], [], []>} : vector<1x8xf32>, vector<8x128xf32>, vector<1x128xf32> -> vector<1x128xf32>
    %235 = tpu.reciprocal %233 {approx = true} : vector<1x1xf32> -> vector<1x1xf32>
    %236 = vector.broadcast %235 : vector<1x1xf32> to vector<1x128xf32>
    %237 = arith.mulf %234, %236 : vector<1x128xf32>
    %c7_101 = arith.constant 7 : index
    %c0_102 = arith.constant 0 : index
    %c0_103 = arith.constant 0 : index
    %238 = vector.load %arg2[%c7_101, %c0_102, %c0_103] : memref<8x16x128xf32, #tpu.memory_space<vmem>>, vector<1x16x128xf32>
    %239 = vector.shape_cast %238 : vector<1x16x128xf32> to vector<16x128xf32>
    %240 = vector.extract_strided_slice %4 {offsets = [7, 0], sizes = [1, 128], strides = [1, 1]} : vector<8x128xf32> to vector<1x128xf32>
    %cst_104 = arith.constant dense<0.000000e+00> : vector<1x16xf32>
    %241 = tpu.matmul %240, %239, %cst_104 {dimension_numbers = #tpu.dot_dimension_numbers<[1], [1], [0], [0], [0, 0, 1, 0], [], []>} : vector<1x128xf32>, vector<16x128xf32>, vector<1x16xf32> -> vector<1x16xf32>
    %cst_105 = arith.constant dense<0xFF800000> : vector<1xf32>
    %242 = vector.multi_reduction <maximumf>, %241, %cst_105 [1] : vector<1x16xf32> to vector<1xf32>
    %243 = vector.shape_cast %242 : vector<1xf32> to vector<1x1xf32>
    %244 = vector.broadcast %243 : vector<1x1xf32> to vector<1x16xf32>
    %245 = arith.subf %241, %244 : vector<1x16xf32>
    %246 = math.exp %245 : vector<1x16xf32>
    %cst_106 = arith.constant dense<0.000000e+00> : vector<1xf32>
    %247 = vector.multi_reduction <add>, %246, %cst_106 [1] : vector<1x16xf32> to vector<1xf32>
    %248 = vector.shape_cast %247 : vector<1xf32> to vector<1x1xf32>
    %cst_107 = arith.constant dense<0.000000e+00> : vector<1x128xf32>
    %249 = tpu.matmul %246, %239, %cst_107 {dimension_numbers = #tpu.dot_dimension_numbers<[1], [0], [0], [1], [0, 0, 1, 1], [], []>} : vector<1x16xf32>, vector<16x128xf32>, vector<1x128xf32> -> vector<1x128xf32>
    %250 = tpu.reciprocal %248 {approx = true} : vector<1x1xf32> -> vector<1x1xf32>
    %251 = vector.broadcast %250 : vector<1x1xf32> to vector<1x128xf32>
    %252 = arith.mulf %249, %251 : vector<1x128xf32>
    %253 = tpu.concatenate %237, %252 in 1 : vector<1x128xf32>, vector<1x128xf32> -> vector<1x256xf32>
    %254 = tpu.concatenate %36, %67, %98, %129, %160, %191, %222, %253 in 0 : vector<1x256xf32>, vector<1x256xf32>, vector<1x256xf32>, vector<1x256xf32>, vector<1x256xf32>, vector<1x256xf32>, vector<1x256xf32>, vector<1x256xf32> -> vector<8x256xf32>
    %c0_108 = arith.constant 0 : index
    %c0_109 = arith.constant 0 : index
    %255 = vector.load %arg5[%c0_108, %c0_109] : memref<256x256xf32, #tpu.memory_space<vmem>>, vector<256x256xf32>
    %cst_110 = arith.constant dense<0.000000e+00> : vector<8x256xf32>
    %256 = tpu.matmul %254, %255, %cst_110 {dimension_numbers = #tpu.dot_dimension_numbers<[1], [0], [0], [1], [0, 0, 1, 1], [], []>} : vector<8x256xf32>, vector<256x256xf32>, vector<8x256xf32> -> vector<8x256xf32>
    %257 = arith.addf %5, %256 : vector<8x256xf32>
    %258 = vector.extract_strided_slice %257 {offsets = [0, 0], sizes = [8, 128], strides = [1, 1]} : vector<8x256xf32> to vector<8x128xf32>
    %259 = vector.extract_strided_slice %257 {offsets = [0, 128], sizes = [8, 128], strides = [1, 1]} : vector<8x256xf32> to vector<8x128xf32>
    %c0_111 = arith.constant 0 : index
    %c0_112 = arith.constant 0 : index
    %c0_113 = arith.constant 0 : index
    %260 = vector.load %arg2[%c0_111, %c0_112, %c0_113] : memref<8x16x128xf32, #tpu.memory_space<vmem>>, vector<1x16x128xf32>
    %261 = vector.shape_cast %260 : vector<1x16x128xf32> to vector<16x128xf32>
    %262 = vector.extract_strided_slice %258 {offsets = [0, 0], sizes = [1, 128], strides = [1, 1]} : vector<8x128xf32> to vector<1x128xf32>
    %cst_114 = arith.constant dense<0.000000e+00> : vector<1x16xf32>
    %263 = tpu.matmul %262, %261, %cst_114 {dimension_numbers = #tpu.dot_dimension_numbers<[1], [1], [0], [0], [0, 0, 1, 0], [], []>} : vector<1x128xf32>, vector<16x128xf32>, vector<1x16xf32> -> vector<1x16xf32>
    %cst_115 = arith.constant dense<0xFF800000> : vector<1xf32>
    %264 = vector.multi_reduction <maximumf>, %263, %cst_115 [1] : vector<1x16xf32> to vector<1xf32>
    %265 = vector.shape_cast %264 : vector<1xf32> to vector<1x1xf32>
    %266 = vector.broadcast %265 : vector<1x1xf32> to vector<1x16xf32>
    %267 = arith.subf %263, %266 : vector<1x16xf32>
    %268 = math.exp %267 : vector<1x16xf32>
    %cst_116 = arith.constant dense<0.000000e+00> : vector<1xf32>
    %269 = vector.multi_reduction <add>, %268, %cst_116 [1] : vector<1x16xf32> to vector<1xf32>
    %270 = vector.shape_cast %269 : vector<1xf32> to vector<1x1xf32>
    %cst_117 = arith.constant dense<0.000000e+00> : vector<1x128xf32>
    %271 = tpu.matmul %268, %261, %cst_117 {dimension_numbers = #tpu.dot_dimension_numbers<[1], [0], [0], [1], [0, 0, 1, 1], [], []>} : vector<1x16xf32>, vector<16x128xf32>, vector<1x128xf32> -> vector<1x128xf32>
    %272 = tpu.reciprocal %270 {approx = true} : vector<1x1xf32> -> vector<1x1xf32>
    %273 = vector.broadcast %272 : vector<1x1xf32> to vector<1x128xf32>
    %274 = arith.mulf %271, %273 : vector<1x128xf32>
    %c0_118 = arith.constant 0 : index
    %c0_119 = arith.constant 0 : index
    %c0_120 = arith.constant 0 : index
    %275 = vector.load %arg1[%c0_118, %c0_119, %c0_120] : memref<8x8x128xf32, #tpu.memory_space<vmem>>, vector<1x8x128xf32>
    %276 = vector.shape_cast %275 : vector<1x8x128xf32> to vector<8x128xf32>
    %277 = vector.extract_strided_slice %259 {offsets = [0, 0], sizes = [1, 128], strides = [1, 1]} : vector<8x128xf32> to vector<1x128xf32>
    %cst_121 = arith.constant dense<0.000000e+00> : vector<1x8xf32>
    %278 = tpu.matmul %277, %276, %cst_121 {dimension_numbers = #tpu.dot_dimension_numbers<[1], [1], [0], [0], [0, 0, 1, 0], [], []>} : vector<1x128xf32>, vector<8x128xf32>, vector<1x8xf32> -> vector<1x8xf32>
    %cst_122 = arith.constant dense<0xFF800000> : vector<1xf32>
    %279 = vector.multi_reduction <maximumf>, %278, %cst_122 [1] : vector<1x8xf32> to vector<1xf32>
    %280 = vector.shape_cast %279 : vector<1xf32> to vector<1x1xf32>
    %281 = vector.broadcast %280 : vector<1x1xf32> to vector<1x8xf32>
    %282 = arith.subf %278, %281 : vector<1x8xf32>
    %283 = math.exp %282 : vector<1x8xf32>
    %cst_123 = arith.constant dense<0.000000e+00> : vector<1xf32>
    %284 = vector.multi_reduction <add>, %283, %cst_123 [1] : vector<1x8xf32> to vector<1xf32>
    %285 = vector.shape_cast %284 : vector<1xf32> to vector<1x1xf32>
    %cst_124 = arith.constant dense<0.000000e+00> : vector<1x128xf32>
    %286 = tpu.matmul %283, %276, %cst_124 {dimension_numbers = #tpu.dot_dimension_numbers<[1], [0], [0], [1], [0, 0, 1, 1], [], []>} : vector<1x8xf32>, vector<8x128xf32>, vector<1x128xf32> -> vector<1x128xf32>
    %287 = tpu.reciprocal %285 {approx = true} : vector<1x1xf32> -> vector<1x1xf32>
    %288 = vector.broadcast %287 : vector<1x1xf32> to vector<1x128xf32>
    %289 = arith.mulf %286, %288 : vector<1x128xf32>
    %290 = tpu.concatenate %289, %274 in 1 : vector<1x128xf32>, vector<1x128xf32> -> vector<1x256xf32>
    %c1_125 = arith.constant 1 : index
    %c0_126 = arith.constant 0 : index
    %c0_127 = arith.constant 0 : index
    %291 = vector.load %arg2[%c1_125, %c0_126, %c0_127] : memref<8x16x128xf32, #tpu.memory_space<vmem>>, vector<1x16x128xf32>
    %292 = vector.shape_cast %291 : vector<1x16x128xf32> to vector<16x128xf32>
    %293 = vector.extract_strided_slice %258 {offsets = [1, 0], sizes = [1, 128], strides = [1, 1]} : vector<8x128xf32> to vector<1x128xf32>
    %cst_128 = arith.constant dense<0.000000e+00> : vector<1x16xf32>
    %294 = tpu.matmul %293, %292, %cst_128 {dimension_numbers = #tpu.dot_dimension_numbers<[1], [1], [0], [0], [0, 0, 1, 0], [], []>} : vector<1x128xf32>, vector<16x128xf32>, vector<1x16xf32> -> vector<1x16xf32>
    %cst_129 = arith.constant dense<0xFF800000> : vector<1xf32>
    %295 = vector.multi_reduction <maximumf>, %294, %cst_129 [1] : vector<1x16xf32> to vector<1xf32>
    %296 = vector.shape_cast %295 : vector<1xf32> to vector<1x1xf32>
    %297 = vector.broadcast %296 : vector<1x1xf32> to vector<1x16xf32>
    %298 = arith.subf %294, %297 : vector<1x16xf32>
    %299 = math.exp %298 : vector<1x16xf32>
    %cst_130 = arith.constant dense<0.000000e+00> : vector<1xf32>
    %300 = vector.multi_reduction <add>, %299, %cst_130 [1] : vector<1x16xf32> to vector<1xf32>
    %301 = vector.shape_cast %300 : vector<1xf32> to vector<1x1xf32>
    %cst_131 = arith.constant dense<0.000000e+00> : vector<1x128xf32>
    %302 = tpu.matmul %299, %292, %cst_131 {dimension_numbers = #tpu.dot_dimension_numbers<[1], [0], [0], [1], [0, 0, 1, 1], [], []>} : vector<1x16xf32>, vector<16x128xf32>, vector<1x128xf32> -> vector<1x128xf32>
    %303 = tpu.reciprocal %301 {approx = true} : vector<1x1xf32> -> vector<1x1xf32>
    %304 = vector.broadcast %303 : vector<1x1xf32> to vector<1x128xf32>
    %305 = arith.mulf %302, %304 : vector<1x128xf32>
    %c1_132 = arith.constant 1 : index
    %c0_133 = arith.constant 0 : index
    %c0_134 = arith.constant 0 : index
    %306 = vector.load %arg1[%c1_132, %c0_133, %c0_134] : memref<8x8x128xf32, #tpu.memory_space<vmem>>, vector<1x8x128xf32>
    %307 = vector.shape_cast %306 : vector<1x8x128xf32> to vector<8x128xf32>
    %308 = vector.extract_strided_slice %259 {offsets = [1, 0], sizes = [1, 128], strides = [1, 1]} : vector<8x128xf32> to vector<1x128xf32>
    %cst_135 = arith.constant dense<0.000000e+00> : vector<1x8xf32>
    %309 = tpu.matmul %308, %307, %cst_135 {dimension_numbers = #tpu.dot_dimension_numbers<[1], [1], [0], [0], [0, 0, 1, 0], [], []>} : vector<1x128xf32>, vector<8x128xf32>, vector<1x8xf32> -> vector<1x8xf32>
    %cst_136 = arith.constant dense<0xFF800000> : vector<1xf32>
    %310 = vector.multi_reduction <maximumf>, %309, %cst_136 [1] : vector<1x8xf32> to vector<1xf32>
    %311 = vector.shape_cast %310 : vector<1xf32> to vector<1x1xf32>
    %312 = vector.broadcast %311 : vector<1x1xf32> to vector<1x8xf32>
    %313 = arith.subf %309, %312 : vector<1x8xf32>
    %314 = math.exp %313 : vector<1x8xf32>
    %cst_137 = arith.constant dense<0.000000e+00> : vector<1xf32>
    %315 = vector.multi_reduction <add>, %314, %cst_137 [1] : vector<1x8xf32> to vector<1xf32>
    %316 = vector.shape_cast %315 : vector<1xf32> to vector<1x1xf32>
    %cst_138 = arith.constant dense<0.000000e+00> : vector<1x128xf32>
    %317 = tpu.matmul %314, %307, %cst_138 {dimension_numbers = #tpu.dot_dimension_numbers<[1], [0], [0], [1], [0, 0, 1, 1], [], []>} : vector<1x8xf32>, vector<8x128xf32>, vector<1x128xf32> -> vector<1x128xf32>
    %318 = tpu.reciprocal %316 {approx = true} : vector<1x1xf32> -> vector<1x1xf32>
    %319 = vector.broadcast %318 : vector<1x1xf32> to vector<1x128xf32>
    %320 = arith.mulf %317, %319 : vector<1x128xf32>
    %321 = tpu.concatenate %320, %305 in 1 : vector<1x128xf32>, vector<1x128xf32> -> vector<1x256xf32>
    %c2_139 = arith.constant 2 : index
    %c0_140 = arith.constant 0 : index
    %c0_141 = arith.constant 0 : index
    %322 = vector.load %arg2[%c2_139, %c0_140, %c0_141] : memref<8x16x128xf32, #tpu.memory_space<vmem>>, vector<1x16x128xf32>
    %323 = vector.shape_cast %322 : vector<1x16x128xf32> to vector<16x128xf32>
    %324 = vector.extract_strided_slice %258 {offsets = [2, 0], sizes = [1, 128], strides = [1, 1]} : vector<8x128xf32> to vector<1x128xf32>
    %cst_142 = arith.constant dense<0.000000e+00> : vector<1x16xf32>
    %325 = tpu.matmul %324, %323, %cst_142 {dimension_numbers = #tpu.dot_dimension_numbers<[1], [1], [0], [0], [0, 0, 1, 0], [], []>} : vector<1x128xf32>, vector<16x128xf32>, vector<1x16xf32> -> vector<1x16xf32>
    %cst_143 = arith.constant dense<0xFF800000> : vector<1xf32>
    %326 = vector.multi_reduction <maximumf>, %325, %cst_143 [1] : vector<1x16xf32> to vector<1xf32>
    %327 = vector.shape_cast %326 : vector<1xf32> to vector<1x1xf32>
    %328 = vector.broadcast %327 : vector<1x1xf32> to vector<1x16xf32>
    %329 = arith.subf %325, %328 : vector<1x16xf32>
    %330 = math.exp %329 : vector<1x16xf32>
    %cst_144 = arith.constant dense<0.000000e+00> : vector<1xf32>
    %331 = vector.multi_reduction <add>, %330, %cst_144 [1] : vector<1x16xf32> to vector<1xf32>
    %332 = vector.shape_cast %331 : vector<1xf32> to vector<1x1xf32>
    %cst_145 = arith.constant dense<0.000000e+00> : vector<1x128xf32>
    %333 = tpu.matmul %330, %323, %cst_145 {dimension_numbers = #tpu.dot_dimension_numbers<[1], [0], [0], [1], [0, 0, 1, 1], [], []>} : vector<1x16xf32>, vector<16x128xf32>, vector<1x128xf32> -> vector<1x128xf32>
    %334 = tpu.reciprocal %332 {approx = true} : vector<1x1xf32> -> vector<1x1xf32>
    %335 = vector.broadcast %334 : vector<1x1xf32> to vector<1x128xf32>
    %336 = arith.mulf %333, %335 : vector<1x128xf32>
    %c2_146 = arith.constant 2 : index
    %c0_147 = arith.constant 0 : index
    %c0_148 = arith.constant 0 : index
    %337 = vector.load %arg1[%c2_146, %c0_147, %c0_148] : memref<8x8x128xf32, #tpu.memory_space<vmem>>, vector<1x8x128xf32>
    %338 = vector.shape_cast %337 : vector<1x8x128xf32> to vector<8x128xf32>
    %339 = vector.extract_strided_slice %259 {offsets = [2, 0], sizes = [1, 128], strides = [1, 1]} : vector<8x128xf32> to vector<1x128xf32>
    %cst_149 = arith.constant dense<0.000000e+00> : vector<1x8xf32>
    %340 = tpu.matmul %339, %338, %cst_149 {dimension_numbers = #tpu.dot_dimension_numbers<[1], [1], [0], [0], [0, 0, 1, 0], [], []>} : vector<1x128xf32>, vector<8x128xf32>, vector<1x8xf32> -> vector<1x8xf32>
    %cst_150 = arith.constant dense<0xFF800000> : vector<1xf32>
    %341 = vector.multi_reduction <maximumf>, %340, %cst_150 [1] : vector<1x8xf32> to vector<1xf32>
    %342 = vector.shape_cast %341 : vector<1xf32> to vector<1x1xf32>
    %343 = vector.broadcast %342 : vector<1x1xf32> to vector<1x8xf32>
    %344 = arith.subf %340, %343 : vector<1x8xf32>
    %345 = math.exp %344 : vector<1x8xf32>
    %cst_151 = arith.constant dense<0.000000e+00> : vector<1xf32>
    %346 = vector.multi_reduction <add>, %345, %cst_151 [1] : vector<1x8xf32> to vector<1xf32>
    %347 = vector.shape_cast %346 : vector<1xf32> to vector<1x1xf32>
    %cst_152 = arith.constant dense<0.000000e+00> : vector<1x128xf32>
    %348 = tpu.matmul %345, %338, %cst_152 {dimension_numbers = #tpu.dot_dimension_numbers<[1], [0], [0], [1], [0, 0, 1, 1], [], []>} : vector<1x8xf32>, vector<8x128xf32>, vector<1x128xf32> -> vector<1x128xf32>
    %349 = tpu.reciprocal %347 {approx = true} : vector<1x1xf32> -> vector<1x1xf32>
    %350 = vector.broadcast %349 : vector<1x1xf32> to vector<1x128xf32>
    %351 = arith.mulf %348, %350 : vector<1x128xf32>
    %352 = tpu.concatenate %351, %336 in 1 : vector<1x128xf32>, vector<1x128xf32> -> vector<1x256xf32>
    %c3_153 = arith.constant 3 : index
    %c0_154 = arith.constant 0 : index
    %c0_155 = arith.constant 0 : index
    %353 = vector.load %arg2[%c3_153, %c0_154, %c0_155] : memref<8x16x128xf32, #tpu.memory_space<vmem>>, vector<1x16x128xf32>
    %354 = vector.shape_cast %353 : vector<1x16x128xf32> to vector<16x128xf32>
    %355 = vector.extract_strided_slice %258 {offsets = [3, 0], sizes = [1, 128], strides = [1, 1]} : vector<8x128xf32> to vector<1x128xf32>
    %cst_156 = arith.constant dense<0.000000e+00> : vector<1x16xf32>
    %356 = tpu.matmul %355, %354, %cst_156 {dimension_numbers = #tpu.dot_dimension_numbers<[1], [1], [0], [0], [0, 0, 1, 0], [], []>} : vector<1x128xf32>, vector<16x128xf32>, vector<1x16xf32> -> vector<1x16xf32>
    %cst_157 = arith.constant dense<0xFF800000> : vector<1xf32>
    %357 = vector.multi_reduction <maximumf>, %356, %cst_157 [1] : vector<1x16xf32> to vector<1xf32>
    %358 = vector.shape_cast %357 : vector<1xf32> to vector<1x1xf32>
    %359 = vector.broadcast %358 : vector<1x1xf32> to vector<1x16xf32>
    %360 = arith.subf %356, %359 : vector<1x16xf32>
    %361 = math.exp %360 : vector<1x16xf32>
    %cst_158 = arith.constant dense<0.000000e+00> : vector<1xf32>
    %362 = vector.multi_reduction <add>, %361, %cst_158 [1] : vector<1x16xf32> to vector<1xf32>
    %363 = vector.shape_cast %362 : vector<1xf32> to vector<1x1xf32>
    %cst_159 = arith.constant dense<0.000000e+00> : vector<1x128xf32>
    %364 = tpu.matmul %361, %354, %cst_159 {dimension_numbers = #tpu.dot_dimension_numbers<[1], [0], [0], [1], [0, 0, 1, 1], [], []>} : vector<1x16xf32>, vector<16x128xf32>, vector<1x128xf32> -> vector<1x128xf32>
    %365 = tpu.reciprocal %363 {approx = true} : vector<1x1xf32> -> vector<1x1xf32>
    %366 = vector.broadcast %365 : vector<1x1xf32> to vector<1x128xf32>
    %367 = arith.mulf %364, %366 : vector<1x128xf32>
    %c3_160 = arith.constant 3 : index
    %c0_161 = arith.constant 0 : index
    %c0_162 = arith.constant 0 : index
    %368 = vector.load %arg1[%c3_160, %c0_161, %c0_162] : memref<8x8x128xf32, #tpu.memory_space<vmem>>, vector<1x8x128xf32>
    %369 = vector.shape_cast %368 : vector<1x8x128xf32> to vector<8x128xf32>
    %370 = vector.extract_strided_slice %259 {offsets = [3, 0], sizes = [1, 128], strides = [1, 1]} : vector<8x128xf32> to vector<1x128xf32>
    %cst_163 = arith.constant dense<0.000000e+00> : vector<1x8xf32>
    %371 = tpu.matmul %370, %369, %cst_163 {dimension_numbers = #tpu.dot_dimension_numbers<[1], [1], [0], [0], [0, 0, 1, 0], [], []>} : vector<1x128xf32>, vector<8x128xf32>, vector<1x8xf32> -> vector<1x8xf32>
    %cst_164 = arith.constant dense<0xFF800000> : vector<1xf32>
    %372 = vector.multi_reduction <maximumf>, %371, %cst_164 [1] : vector<1x8xf32> to vector<1xf32>
    %373 = vector.shape_cast %372 : vector<1xf32> to vector<1x1xf32>
    %374 = vector.broadcast %373 : vector<1x1xf32> to vector<1x8xf32>
    %375 = arith.subf %371, %374 : vector<1x8xf32>
    %376 = math.exp %375 : vector<1x8xf32>
    %cst_165 = arith.constant dense<0.000000e+00> : vector<1xf32>
    %377 = vector.multi_reduction <add>, %376, %cst_165 [1] : vector<1x8xf32> to vector<1xf32>
    %378 = vector.shape_cast %377 : vector<1xf32> to vector<1x1xf32>
    %cst_166 = arith.constant dense<0.000000e+00> : vector<1x128xf32>
    %379 = tpu.matmul %376, %369, %cst_166 {dimension_numbers = #tpu.dot_dimension_numbers<[1], [0], [0], [1], [0, 0, 1, 1], [], []>} : vector<1x8xf32>, vector<8x128xf32>, vector<1x128xf32> -> vector<1x128xf32>
    %380 = tpu.reciprocal %378 {approx = true} : vector<1x1xf32> -> vector<1x1xf32>
    %381 = vector.broadcast %380 : vector<1x1xf32> to vector<1x128xf32>
    %382 = arith.mulf %379, %381 : vector<1x128xf32>
    %383 = tpu.concatenate %382, %367 in 1 : vector<1x128xf32>, vector<1x128xf32> -> vector<1x256xf32>
    %c4_167 = arith.constant 4 : index
    %c0_168 = arith.constant 0 : index
    %c0_169 = arith.constant 0 : index
    %384 = vector.load %arg2[%c4_167, %c0_168, %c0_169] : memref<8x16x128xf32, #tpu.memory_space<vmem>>, vector<1x16x128xf32>
    %385 = vector.shape_cast %384 : vector<1x16x128xf32> to vector<16x128xf32>
    %386 = vector.extract_strided_slice %258 {offsets = [4, 0], sizes = [1, 128], strides = [1, 1]} : vector<8x128xf32> to vector<1x128xf32>
    %cst_170 = arith.constant dense<0.000000e+00> : vector<1x16xf32>
    %387 = tpu.matmul %386, %385, %cst_170 {dimension_numbers = #tpu.dot_dimension_numbers<[1], [1], [0], [0], [0, 0, 1, 0], [], []>} : vector<1x128xf32>, vector<16x128xf32>, vector<1x16xf32> -> vector<1x16xf32>
    %cst_171 = arith.constant dense<0xFF800000> : vector<1xf32>
    %388 = vector.multi_reduction <maximumf>, %387, %cst_171 [1] : vector<1x16xf32> to vector<1xf32>
    %389 = vector.shape_cast %388 : vector<1xf32> to vector<1x1xf32>
    %390 = vector.broadcast %389 : vector<1x1xf32> to vector<1x16xf32>
    %391 = arith.subf %387, %390 : vector<1x16xf32>
    %392 = math.exp %391 : vector<1x16xf32>
    %cst_172 = arith.constant dense<0.000000e+00> : vector<1xf32>
    %393 = vector.multi_reduction <add>, %392, %cst_172 [1] : vector<1x16xf32> to vector<1xf32>
    %394 = vector.shape_cast %393 : vector<1xf32> to vector<1x1xf32>
    %cst_173 = arith.constant dense<0.000000e+00> : vector<1x128xf32>
    %395 = tpu.matmul %392, %385, %cst_173 {dimension_numbers = #tpu.dot_dimension_numbers<[1], [0], [0], [1], [0, 0, 1, 1], [], []>} : vector<1x16xf32>, vector<16x128xf32>, vector<1x128xf32> -> vector<1x128xf32>
    %396 = tpu.reciprocal %394 {approx = true} : vector<1x1xf32> -> vector<1x1xf32>
    %397 = vector.broadcast %396 : vector<1x1xf32> to vector<1x128xf32>
    %398 = arith.mulf %395, %397 : vector<1x128xf32>
    %c4_174 = arith.constant 4 : index
    %c0_175 = arith.constant 0 : index
    %c0_176 = arith.constant 0 : index
    %399 = vector.load %arg1[%c4_174, %c0_175, %c0_176] : memref<8x8x128xf32, #tpu.memory_space<vmem>>, vector<1x8x128xf32>
    %400 = vector.shape_cast %399 : vector<1x8x128xf32> to vector<8x128xf32>
    %401 = vector.extract_strided_slice %259 {offsets = [4, 0], sizes = [1, 128], strides = [1, 1]} : vector<8x128xf32> to vector<1x128xf32>
    %cst_177 = arith.constant dense<0.000000e+00> : vector<1x8xf32>
    %402 = tpu.matmul %401, %400, %cst_177 {dimension_numbers = #tpu.dot_dimension_numbers<[1], [1], [0], [0], [0, 0, 1, 0], [], []>} : vector<1x128xf32>, vector<8x128xf32>, vector<1x8xf32> -> vector<1x8xf32>
    %cst_178 = arith.constant dense<0xFF800000> : vector<1xf32>
    %403 = vector.multi_reduction <maximumf>, %402, %cst_178 [1] : vector<1x8xf32> to vector<1xf32>
    %404 = vector.shape_cast %403 : vector<1xf32> to vector<1x1xf32>
    %405 = vector.broadcast %404 : vector<1x1xf32> to vector<1x8xf32>
    %406 = arith.subf %402, %405 : vector<1x8xf32>
    %407 = math.exp %406 : vector<1x8xf32>
    %cst_179 = arith.constant dense<0.000000e+00> : vector<1xf32>
    %408 = vector.multi_reduction <add>, %407, %cst_179 [1] : vector<1x8xf32> to vector<1xf32>
    %409 = vector.shape_cast %408 : vector<1xf32> to vector<1x1xf32>
    %cst_180 = arith.constant dense<0.000000e+00> : vector<1x128xf32>
    %410 = tpu.matmul %407, %400, %cst_180 {dimension_numbers = #tpu.dot_dimension_numbers<[1], [0], [0], [1], [0, 0, 1, 1], [], []>} : vector<1x8xf32>, vector<8x128xf32>, vector<1x128xf32> -> vector<1x128xf32>
    %411 = tpu.reciprocal %409 {approx = true} : vector<1x1xf32> -> vector<1x1xf32>
    %412 = vector.broadcast %411 : vector<1x1xf32> to vector<1x128xf32>
    %413 = arith.mulf %410, %412 : vector<1x128xf32>
    %414 = tpu.concatenate %413, %398 in 1 : vector<1x128xf32>, vector<1x128xf32> -> vector<1x256xf32>
    %c5_181 = arith.constant 5 : index
    %c0_182 = arith.constant 0 : index
    %c0_183 = arith.constant 0 : index
    %415 = vector.load %arg2[%c5_181, %c0_182, %c0_183] : memref<8x16x128xf32, #tpu.memory_space<vmem>>, vector<1x16x128xf32>
    %416 = vector.shape_cast %415 : vector<1x16x128xf32> to vector<16x128xf32>
    %417 = vector.extract_strided_slice %258 {offsets = [5, 0], sizes = [1, 128], strides = [1, 1]} : vector<8x128xf32> to vector<1x128xf32>
    %cst_184 = arith.constant dense<0.000000e+00> : vector<1x16xf32>
    %418 = tpu.matmul %417, %416, %cst_184 {dimension_numbers = #tpu.dot_dimension_numbers<[1], [1], [0], [0], [0, 0, 1, 0], [], []>} : vector<1x128xf32>, vector<16x128xf32>, vector<1x16xf32> -> vector<1x16xf32>
    %cst_185 = arith.constant dense<0xFF800000> : vector<1xf32>
    %419 = vector.multi_reduction <maximumf>, %418, %cst_185 [1] : vector<1x16xf32> to vector<1xf32>
    %420 = vector.shape_cast %419 : vector<1xf32> to vector<1x1xf32>
    %421 = vector.broadcast %420 : vector<1x1xf32> to vector<1x16xf32>
    %422 = arith.subf %418, %421 : vector<1x16xf32>
    %423 = math.exp %422 : vector<1x16xf32>
    %cst_186 = arith.constant dense<0.000000e+00> : vector<1xf32>
    %424 = vector.multi_reduction <add>, %423, %cst_186 [1] : vector<1x16xf32> to vector<1xf32>
    %425 = vector.shape_cast %424 : vector<1xf32> to vector<1x1xf32>
    %cst_187 = arith.constant dense<0.000000e+00> : vector<1x128xf32>
    %426 = tpu.matmul %423, %416, %cst_187 {dimension_numbers = #tpu.dot_dimension_numbers<[1], [0], [0], [1], [0, 0, 1, 1], [], []>} : vector<1x16xf32>, vector<16x128xf32>, vector<1x128xf32> -> vector<1x128xf32>
    %427 = tpu.reciprocal %425 {approx = true} : vector<1x1xf32> -> vector<1x1xf32>
    %428 = vector.broadcast %427 : vector<1x1xf32> to vector<1x128xf32>
    %429 = arith.mulf %426, %428 : vector<1x128xf32>
    %c5_188 = arith.constant 5 : index
    %c0_189 = arith.constant 0 : index
    %c0_190 = arith.constant 0 : index
    %430 = vector.load %arg1[%c5_188, %c0_189, %c0_190] : memref<8x8x128xf32, #tpu.memory_space<vmem>>, vector<1x8x128xf32>
    %431 = vector.shape_cast %430 : vector<1x8x128xf32> to vector<8x128xf32>
    %432 = vector.extract_strided_slice %259 {offsets = [5, 0], sizes = [1, 128], strides = [1, 1]} : vector<8x128xf32> to vector<1x128xf32>
    %cst_191 = arith.constant dense<0.000000e+00> : vector<1x8xf32>
    %433 = tpu.matmul %432, %431, %cst_191 {dimension_numbers = #tpu.dot_dimension_numbers<[1], [1], [0], [0], [0, 0, 1, 0], [], []>} : vector<1x128xf32>, vector<8x128xf32>, vector<1x8xf32> -> vector<1x8xf32>
    %cst_192 = arith.constant dense<0xFF800000> : vector<1xf32>
    %434 = vector.multi_reduction <maximumf>, %433, %cst_192 [1] : vector<1x8xf32> to vector<1xf32>
    %435 = vector.shape_cast %434 : vector<1xf32> to vector<1x1xf32>
    %436 = vector.broadcast %435 : vector<1x1xf32> to vector<1x8xf32>
    %437 = arith.subf %433, %436 : vector<1x8xf32>
    %438 = math.exp %437 : vector<1x8xf32>
    %cst_193 = arith.constant dense<0.000000e+00> : vector<1xf32>
    %439 = vector.multi_reduction <add>, %438, %cst_193 [1] : vector<1x8xf32> to vector<1xf32>
    %440 = vector.shape_cast %439 : vector<1xf32> to vector<1x1xf32>
    %cst_194 = arith.constant dense<0.000000e+00> : vector<1x128xf32>
    %441 = tpu.matmul %438, %431, %cst_194 {dimension_numbers = #tpu.dot_dimension_numbers<[1], [0], [0], [1], [0, 0, 1, 1], [], []>} : vector<1x8xf32>, vector<8x128xf32>, vector<1x128xf32> -> vector<1x128xf32>
    %442 = tpu.reciprocal %440 {approx = true} : vector<1x1xf32> -> vector<1x1xf32>
    %443 = vector.broadcast %442 : vector<1x1xf32> to vector<1x128xf32>
    %444 = arith.mulf %441, %443 : vector<1x128xf32>
    %445 = tpu.concatenate %444, %429 in 1 : vector<1x128xf32>, vector<1x128xf32> -> vector<1x256xf32>
    %c6_195 = arith.constant 6 : index
    %c0_196 = arith.constant 0 : index
    %c0_197 = arith.constant 0 : index
    %446 = vector.load %arg2[%c6_195, %c0_196, %c0_197] : memref<8x16x128xf32, #tpu.memory_space<vmem>>, vector<1x16x128xf32>
    %447 = vector.shape_cast %446 : vector<1x16x128xf32> to vector<16x128xf32>
    %448 = vector.extract_strided_slice %258 {offsets = [6, 0], sizes = [1, 128], strides = [1, 1]} : vector<8x128xf32> to vector<1x128xf32>
    %cst_198 = arith.constant dense<0.000000e+00> : vector<1x16xf32>
    %449 = tpu.matmul %448, %447, %cst_198 {dimension_numbers = #tpu.dot_dimension_numbers<[1], [1], [0], [0], [0, 0, 1, 0], [], []>} : vector<1x128xf32>, vector<16x128xf32>, vector<1x16xf32> -> vector<1x16xf32>
    %cst_199 = arith.constant dense<0xFF800000> : vector<1xf32>
    %450 = vector.multi_reduction <maximumf>, %449, %cst_199 [1] : vector<1x16xf32> to vector<1xf32>
    %451 = vector.shape_cast %450 : vector<1xf32> to vector<1x1xf32>
    %452 = vector.broadcast %451 : vector<1x1xf32> to vector<1x16xf32>
    %453 = arith.subf %449, %452 : vector<1x16xf32>
    %454 = math.exp %453 : vector<1x16xf32>
    %cst_200 = arith.constant dense<0.000000e+00> : vector<1xf32>
    %455 = vector.multi_reduction <add>, %454, %cst_200 [1] : vector<1x16xf32> to vector<1xf32>
    %456 = vector.shape_cast %455 : vector<1xf32> to vector<1x1xf32>
    %cst_201 = arith.constant dense<0.000000e+00> : vector<1x128xf32>
    %457 = tpu.matmul %454, %447, %cst_201 {dimension_numbers = #tpu.dot_dimension_numbers<[1], [0], [0], [1], [0, 0, 1, 1], [], []>} : vector<1x16xf32>, vector<16x128xf32>, vector<1x128xf32> -> vector<1x128xf32>
    %458 = tpu.reciprocal %456 {approx = true} : vector<1x1xf32> -> vector<1x1xf32>
    %459 = vector.broadcast %458 : vector<1x1xf32> to vector<1x128xf32>
    %460 = arith.mulf %457, %459 : vector<1x128xf32>
    %c6_202 = arith.constant 6 : index
    %c0_203 = arith.constant 0 : index
    %c0_204 = arith.constant 0 : index
    %461 = vector.load %arg1[%c6_202, %c0_203, %c0_204] : memref<8x8x128xf32, #tpu.memory_space<vmem>>, vector<1x8x128xf32>
    %462 = vector.shape_cast %461 : vector<1x8x128xf32> to vector<8x128xf32>
    %463 = vector.extract_strided_slice %259 {offsets = [6, 0], sizes = [1, 128], strides = [1, 1]} : vector<8x128xf32> to vector<1x128xf32>
    %cst_205 = arith.constant dense<0.000000e+00> : vector<1x8xf32>
    %464 = tpu.matmul %463, %462, %cst_205 {dimension_numbers = #tpu.dot_dimension_numbers<[1], [1], [0], [0], [0, 0, 1, 0], [], []>} : vector<1x128xf32>, vector<8x128xf32>, vector<1x8xf32> -> vector<1x8xf32>
    %cst_206 = arith.constant dense<0xFF800000> : vector<1xf32>
    %465 = vector.multi_reduction <maximumf>, %464, %cst_206 [1] : vector<1x8xf32> to vector<1xf32>
    %466 = vector.shape_cast %465 : vector<1xf32> to vector<1x1xf32>
    %467 = vector.broadcast %466 : vector<1x1xf32> to vector<1x8xf32>
    %468 = arith.subf %464, %467 : vector<1x8xf32>
    %469 = math.exp %468 : vector<1x8xf32>
    %cst_207 = arith.constant dense<0.000000e+00> : vector<1xf32>
    %470 = vector.multi_reduction <add>, %469, %cst_207 [1] : vector<1x8xf32> to vector<1xf32>
    %471 = vector.shape_cast %470 : vector<1xf32> to vector<1x1xf32>
    %cst_208 = arith.constant dense<0.000000e+00> : vector<1x128xf32>
    %472 = tpu.matmul %469, %462, %cst_208 {dimension_numbers = #tpu.dot_dimension_numbers<[1], [0], [0], [1], [0, 0, 1, 1], [], []>} : vector<1x8xf32>, vector<8x128xf32>, vector<1x128xf32> -> vector<1x128xf32>
    %473 = tpu.reciprocal %471 {approx = true} : vector<1x1xf32> -> vector<1x1xf32>
    %474 = vector.broadcast %473 : vector<1x1xf32> to vector<1x128xf32>
    %475 = arith.mulf %472, %474 : vector<1x128xf32>
    %476 = tpu.concatenate %475, %460 in 1 : vector<1x128xf32>, vector<1x128xf32> -> vector<1x256xf32>
    %c7_209 = arith.constant 7 : index
    %c0_210 = arith.constant 0 : index
    %c0_211 = arith.constant 0 : index
    %477 = vector.load %arg2[%c7_209, %c0_210, %c0_211] : memref<8x16x128xf32, #tpu.memory_space<vmem>>, vector<1x16x128xf32>
    %478 = vector.shape_cast %477 : vector<1x16x128xf32> to vector<16x128xf32>
    %479 = vector.extract_strided_slice %258 {offsets = [7, 0], sizes = [1, 128], strides = [1, 1]} : vector<8x128xf32> to vector<1x128xf32>
    %cst_212 = arith.constant dense<0.000000e+00> : vector<1x16xf32>
    %480 = tpu.matmul %479, %478, %cst_212 {dimension_numbers = #tpu.dot_dimension_numbers<[1], [1], [0], [0], [0, 0, 1, 0], [], []>} : vector<1x128xf32>, vector<16x128xf32>, vector<1x16xf32> -> vector<1x16xf32>
    %cst_213 = arith.constant dense<0xFF800000> : vector<1xf32>
    %481 = vector.multi_reduction <maximumf>, %480, %cst_213 [1] : vector<1x16xf32> to vector<1xf32>
    %482 = vector.shape_cast %481 : vector<1xf32> to vector<1x1xf32>
    %483 = vector.broadcast %482 : vector<1x1xf32> to vector<1x16xf32>
    %484 = arith.subf %480, %483 : vector<1x16xf32>
    %485 = math.exp %484 : vector<1x16xf32>
    %cst_214 = arith.constant dense<0.000000e+00> : vector<1xf32>
    %486 = vector.multi_reduction <add>, %485, %cst_214 [1] : vector<1x16xf32> to vector<1xf32>
    %487 = vector.shape_cast %486 : vector<1xf32> to vector<1x1xf32>
    %cst_215 = arith.constant dense<0.000000e+00> : vector<1x128xf32>
    %488 = tpu.matmul %485, %478, %cst_215 {dimension_numbers = #tpu.dot_dimension_numbers<[1], [0], [0], [1], [0, 0, 1, 1], [], []>} : vector<1x16xf32>, vector<16x128xf32>, vector<1x128xf32> -> vector<1x128xf32>
    %489 = tpu.reciprocal %487 {approx = true} : vector<1x1xf32> -> vector<1x1xf32>
    %490 = vector.broadcast %489 : vector<1x1xf32> to vector<1x128xf32>
    %491 = arith.mulf %488, %490 : vector<1x128xf32>
    %c7_216 = arith.constant 7 : index
    %c0_217 = arith.constant 0 : index
    %c0_218 = arith.constant 0 : index
    %492 = vector.load %arg1[%c7_216, %c0_217, %c0_218] : memref<8x8x128xf32, #tpu.memory_space<vmem>>, vector<1x8x128xf32>
    %493 = vector.shape_cast %492 : vector<1x8x128xf32> to vector<8x128xf32>
    %494 = vector.extract_strided_slice %259 {offsets = [7, 0], sizes = [1, 128], strides = [1, 1]} : vector<8x128xf32> to vector<1x128xf32>
    %cst_219 = arith.constant dense<0.000000e+00> : vector<1x8xf32>
    %495 = tpu.matmul %494, %493, %cst_219 {dimension_numbers = #tpu.dot_dimension_numbers<[1], [1], [0], [0], [0, 0, 1, 0], [], []>} : vector<1x128xf32>, vector<8x128xf32>, vector<1x8xf32> -> vector<1x8xf32>
    %cst_220 = arith.constant dense<0xFF800000> : vector<1xf32>
    %496 = vector.multi_reduction <maximumf>, %495, %cst_220 [1] : vector<1x8xf32> to vector<1xf32>
    %497 = vector.shape_cast %496 : vector<1xf32> to vector<1x1xf32>
    %498 = vector.broadcast %497 : vector<1x1xf32> to vector<1x8xf32>
    %499 = arith.subf %495, %498 : vector<1x8xf32>
    %500 = math.exp %499 : vector<1x8xf32>
    %cst_221 = arith.constant dense<0.000000e+00> : vector<1xf32>
    %501 = vector.multi_reduction <add>, %500, %cst_221 [1] : vector<1x8xf32> to vector<1xf32>
    %502 = vector.shape_cast %501 : vector<1xf32> to vector<1x1xf32>
    %cst_222 = arith.constant dense<0.000000e+00> : vector<1x128xf32>
    %503 = tpu.matmul %500, %493, %cst_222 {dimension_numbers = #tpu.dot_dimension_numbers<[1], [0], [0], [1], [0, 0, 1, 1], [], []>} : vector<1x8xf32>, vector<8x128xf32>, vector<1x128xf32> -> vector<1x128xf32>
    %504 = tpu.reciprocal %502 {approx = true} : vector<1x1xf32> -> vector<1x1xf32>
    %505 = vector.broadcast %504 : vector<1x1xf32> to vector<1x128xf32>
    %506 = arith.mulf %503, %505 : vector<1x128xf32>
    %507 = tpu.concatenate %506, %491 in 1 : vector<1x128xf32>, vector<1x128xf32> -> vector<1x256xf32>
    %508 = tpu.concatenate %290, %321, %352, %383, %414, %445, %476, %507 in 0 : vector<1x256xf32>, vector<1x256xf32>, vector<1x256xf32>, vector<1x256xf32>, vector<1x256xf32>, vector<1x256xf32>, vector<1x256xf32>, vector<1x256xf32> -> vector<8x256xf32>
    %c0_223 = arith.constant 0 : index
    %c0_224 = arith.constant 0 : index
    %509 = vector.load %arg6[%c0_223, %c0_224] : memref<8x256xf32, #tpu.memory_space<vmem>>, vector<8x256xf32>
    tpu.vector_store %arg6[%c0_223, %c0_224], %508 {strides = array<i32>} : memref<8x256xf32, #tpu.memory_space<vmem>>, vector<8x256xf32>,
    return
  }
  func.func @transform_0(%arg0: i32) -> (i32, i32, i32) {
    %c0_i32 = arith.constant 0 : i32
    %c0_i32_0 = arith.constant 0 : i32
    %c0_i32_1 = arith.constant 0 : i32
    return %arg0, %c0_i32, %c0_i32_0 : i32, i32, i32
  }
  func.func @transform_1(%arg0: i32) -> (i32, i32, i32) {
    %c0_i32 = arith.constant 0 : i32
    %c0_i32_0 = arith.constant 0 : i32
    %c0_i32_1 = arith.constant 0 : i32
    return %arg0, %c0_i32, %c0_i32_0 : i32, i32, i32
  }
  func.func @transform_2(%arg0: i32) -> (i32, i32) {
    %c0_i32 = arith.constant 0 : i32
    %c0_i32_0 = arith.constant 0 : i32
    return %arg0, %c0_i32 : i32, i32
  }
  func.func @transform_3(%arg0: i32) -> (i32, i32) {
    %c0_i32 = arith.constant 0 : i32
    %c0_i32_0 = arith.constant 0 : i32
    %c0_i32_1 = arith.constant 0 : i32
    return %c0_i32, %c0_i32_0 : i32, i32
  }
  func.func @transform_4(%arg0: i32) -> (i32, i32) {
    %c0_i32 = arith.constant 0 : i32
    %c0_i32_0 = arith.constant 0 : i32
    %c0_i32_1 = arith.constant 0 : i32
    return %c0_i32, %c0_i32_0 : i32, i32
  }
  func.func @transform_5(%arg0: i32) -> (i32, i32) {
    %c0_i32 = arith.constant 0 : i32
    %c0_i32_0 = arith.constant 0 : i32
    return %arg0, %c0_i32 : i32, i32
  }
}

</mosaic_0001>

<bundles_post_ra>
// kernel: _sym_double_attention_batched_impl.1
= control target key start
LH: loop header
LB: loop body
LE: loop exit
PB: predicated region body
PF: predicated region fallthrough
CT: control target
= control target key end

     0   :  { %s2811_s18 = smov 0   ;;  %s3625_s0 = inlined_call_operand.vmem [shape: f32[16,8,128], index: 0, kind: input, shape index: {}]   ;;  %s3626_s1 = inlined_call_operand.vmem [shape: f32[16,16,128], index: 1, kind: input, shape index: {}]   ;;  %s3627_s2 = inlined_call_operand.vmem [shape: f32[16,24], index: 2, kind: input, shape index: {}]   ;;  %s3628_s3 = inlined_call_operand.vmem [shape: f32[24,512], index: 3, kind: input, shape index: {}]   ;;  %s3629_s4 = inlined_call_operand.vmem [shape: f32[256,256], index: 4, kind: input, shape index: {}]   ;;  %s3630_s5 = inlined_call_operand.vmem [shape: f32[16,256], index: 5, kind: output, shape index: {}]  }
   0x1 LB: > { %s2542_s19 = sadd.s32 4294967295, %s2779_s18   ;;  %p2546_p0 = scmp.ge.s32.totalorder %s2779_s18, 1  ;;  %s2779_s18 = sphi %s2811_s18, %s15_s18  }
   0x2   : > { %p209_p1 = scmp.lt.s32.totalorder %s2779_s18, 3 }
   0x4   : > { %p210_p2 = pnand %p2546_p0, %p209_p1 }
   0x5   : > { %p260_p3 = scmp.lt.s32.totalorder (!%p210_p2), %s2542_s19, 1  ;;  %s2547_s26 = sshll.u32 (!%p210_p2), %s2542_s19, 3 }
   0x6   : > { %213 = sbr.rel (%p210_p2) target bundleno = 1190 (0x4a6), region = 40  ;;  %p248_p4 = scmp.lt.s32.totalorder (!%p210_p2), %s2547_s26, 15 }
   0xb   : > { %v278_v0 = vld [vmem:[%s3628_s3 + $0x40] sm:$0xff]  ;;  %v279_v1 = vld [vmem:[%s3628_s3 + $0x48] sm:$0xff]  ;;  %s3632_s19 = smov (!%p260_p3, %s2542_s19), 1  ;;  %v280_v6 = vld [vmem:[%s3628_s3 + $0x50] sm:$0xff]  ;;  %s3634_s26 = smov (!%p248_p4, %s2547_s26), 15  ;;  %vm282_vm0 = vcmask 195584  }
   0xc   : > { %v274_v2 = vld [vmem:[%s3628_s3 + $0x20] sm:$0xff]  ;;  %299 = vmatpush.msra.mxu0 %v278_v0  ;;  %319 = vmatpush.msra.mxu1 %v279_v1  ;;  %v275_v3 = vld [vmem:[%s3628_s3 + $0x28] sm:$0xff]  ;;  %v276_v7 = vld [vmem:[%s3628_s3 + $0x30] sm:$0xff]  ;;  %s2552_s12 = sshll.u32 %s3632_s19, 3  ;;  %s2614_s20 = sshll.u32 %s3634_s26, 4  ;;  %vm445_vm1 = vcmask 122880  }
   0xd   : > { %v270_v4 = vld [vmem:[%s3628_s3] sm:$0xff]  ;;  %v271_v5 = vld [vmem:[%s3628_s3 + $0x8] sm:$0xff]  ;;  %339 = vmatpush.msra.mxu2 %v280_v6  ;;  %s263_s15 = scalar_lea.vmem %s3627_s2, %s2552_s12  ;;  %v272_v8 = vld [vmem:[%s3628_s3 + $0x10] sm:$0xff]  ;;  %s2857_s23 = scalar_lea.vmem %s3626_s1, %s2614_s20  ;;  %vm387_vm2 = vcmask 57344   ;;  %vm455_vm3 = vcmask 130048   ;;  %vm397_vm4 = vcmask 64512  }
   0xe   : > { %300 = vmatpush.msra.mxu0 %v274_v2  ;;  %320 = vmatpush.msra.mxu1 %v275_v3  ;;  %v2852_v9 = vld [vmem:[%s263_s15] sm:$0xff]  ;;  %s2548_s24 = sshll.u32 %s3634_s26, 3  ;;  %v2864_v10 = vld [vmem:[%s2857_s23 + $0x8] sm:$0xff]  ;;  %v2884_v13 = vld [vmem:[%s2857_s23 + $0x18] sm:$0xff]  ;;  %vm1344_vm5 = vcmask 1040384   ;;  %vm1347_vm6 = vcmask 1041408  }
   0xf   : > { %340 = vmatpush.msra.mxu2 %v276_v7  ;;  %s2869_s28 = scalar_lea.vmem %s3625_s0, %s2548_s24  ;;  %v2880_v12 = vld [vmem:[%s2857_s23] sm:$0xff]  ;;  %v2889_v15 = vld [vmem:[%s2857_s23 + $0x10] sm:$0xff]  ;;  %v2893_v16 = vld [vmem:[%s2857_s23 + $0x28] sm:$0xff]  ;;  %vm1350_vm7 = vcmask 1042432   ;;  %vm1353_vm8 = vcmask 1043456   ;;  %vm1356_vm9 = vcmask 1044480  }
  0x10   : > { %301 = vmatpush.msra.mxu0 %v270_v4  ;;  %321 = vmatpush.msra.mxu1 %v271_v5  ;;  %v2872_v11 = vld [vmem:[%s2869_s28] sm:$0xff]  ;;  %v2561_v14 = vld [vmem:[%s2869_s28 + $0x8] sm:$0xff]  ;;  %v2896_v17 = vld [vmem:[%s2869_s28 + $0x10] sm:$0xff]  ;;  %vm1359_vm10 = vcmask 1045504   ;;  %vm1362_vm11 = vcmask 1046528  }
  0x11   : > { %2555 = vmatmul.msk.f32.vlgmr.msra.gmra.mxu0 %vm282_vm0, %v2852_v9  ;;  %2556 = vmatmul.msk.f32.vlgmr.msra.gmra.mxu1 %vm282_vm0, %v2852_v9  ;;  %v2907_v20 = vld [vmem:[%s2857_s23 + $0x20] sm:$0xff]  ;;  %v2913_v23 = vld [vmem:[%s2857_s23 + $0x38] sm:$0xff]  ;;  %v2921_v25 = vld [vmem:[%s2857_s23 + $0x30] sm:$0xff] }
  0x12   : > { %341 = vmatpush.msra.mxu2 %v272_v8  ;;  %382 = vmatpush.xpose.msrb.mxu0 %v2872_v11  ;;  %v2916_v24 = vld [vmem:[%s2869_s28 + $0x18] sm:$0xff]  ;;  %v2927_v28 = vld [vmem:[%s2857_s23 + $0x48] sm:$0xff]  ;;  %v2930_v29 = vld [vmem:[%s2869_s28 + $0x20] sm:$0xff] }
  0x13   : > { %2557 = vmatmul.msk.f32.vlgmr.msra.gmra.mxu2 %vm282_vm0, %v2852_v9  ;;  %416 = vmatpush.msrb.mxu1 %v2872_v11  ;;  %v2935_v30 = vld [vmem:[%s2857_s23 + $0x40] sm:$0xff]  ;;  %v2941_v33 = vld [vmem:[%s2857_s23 + $0x58] sm:$0xff]  ;;  %v2944_v34 = vld [vmem:[%s2869_s28 + $0x28] sm:$0xff] }
  0x14   : > { %439 = vmatpush.xpose.msrb.mxu2 %v2864_v10  ;;  %v2949_v35 = vld [vmem:[%s2857_s23 + $0x50] sm:$0xff]  ;;  %v2955_v38 = vld [vmem:[%s2857_s23 + $0x68] sm:$0xff]  ;;  %v2963_v40 = vld [vmem:[%s2857_s23 + $0x60] sm:$0xff] }
  0x15   : > { %533 = vmatpush.msra.mxu1 %v2561_v14  ;;  %v2958_v39 = vld [vmem:[%s2869_s28 + $0x30] sm:$0xff]  ;;  %v2969_v43 = vld [vmem:[%s2857_s23 + $0x78] sm:$0xff] }
  0x16   : > { %501 = vmatpush.xpose.msra.mxu0 %v2561_v14  ;;  %v2972_v44 = vld [vmem:[%s2869_s28 + $0x38] sm:$0xff]  ;;  %v2977_v45 = vld [vmem:[%s2857_s23 + $0x70] sm:$0xff] }
  0x17   : > { %v281_v4 = vld [vmem:[%s3628_s3 + $0x58] sm:$0xff] }
  0x18   : > { %440 = vmatpush.xpose.msrb.mxu2 %v2880_v12  ;;  %359 = vmatpush.msra.mxu3 %v281_v4 }
  0x1c   : > { %560 = vmatpush.xpose.msra.mxu2 %v2884_v13 }
  0x20   : > { %561 = vmatpush.xpose.msra.mxu2 %v2889_v15 }
  0x8e   : > { %v2898_v18 = vpop.f32.mrf.mxu0  ;;  %v2900_v19 = vpop.f32.mrf.mxu1 }
  0x8f   : > { %383 = vmatmul.f32.vlgmr.msrb.gmra.mxu0 %v2898_v18  ;;  %441 = vmatmul.f32.vlgmr.msrb.gmra.mxu2 %v2900_v19  ;;  %v484_v21 = vrot.slane %v2898_v18, 1  ;;  %v544_v22 = vrot.slane %v2900_v19, 1  ;;  %v602_v26 = vrot.slane %v2898_v18, 2  ;;  %v661_v27 = vrot.slane %v2900_v19, 2 }
  0x90   : > { %677 = vmatpush.xpose.msrb.mxu2 %v2893_v16  ;;  %619 = vmatpush.xpose.msrb.mxu0 %v2896_v17  ;;  %v719_v31 = vrot.slane %v2898_v18, 3  ;;  %v778_v32 = vrot.slane %v2900_v19, 3  ;;  %v836_v36 = vrot.slane %v2898_v18, 4  ;;  %v895_v37 = vrot.slane %v2900_v19, 4 }
  0x91   : > { %v953_v41 = vrot.slane %v2898_v18, 5  ;;  %v1012_v42 = vrot.slane %v2900_v19, 5  ;;  %v1070_v46 = vrot.slane %v2898_v18, 6  ;;  %v1129_v47 = vrot.slane %v2900_v19, 6 }
  0x92   : > { %v1187_v48 = vrot.slane %v2898_v18, 7  ;;  %v1246_v49 = vrot.slane %v2900_v19, 7 }
  0x94   : > { %678 = vmatpush.xpose.msrb.mxu2 %v2907_v20 }
  0x96   : > { %v2984_v50 = vpop.f32.mrf.mxu2 }
  0x97   : > { %502 = vmatmul.f32.vlgmr.msra.gmra.mxu0 %v484_v21  ;;  %562 = vmatmul.f32.vlgmr.msra.gmra.mxu2 %v544_v22 }
  0x98   : > { %794 = vmatpush.xpose.msra.mxu2 %v2913_v23  ;;  %736 = vmatpush.xpose.msra.mxu0 %v2916_v24 }
  0x9c   : > { %795 = vmatpush.xpose.msra.mxu2 %v2921_v25 }
  0x9f   : > { %620 = vmatmul.f32.vlgmr.msrb.gmra.mxu0 %v602_v26  ;;  %679 = vmatmul.f32.vlgmr.msrb.gmra.mxu2 %v661_v27 }
  0xa0   : > { %911 = vmatpush.xpose.msrb.mxu2 %v2927_v28  ;;  %853 = vmatpush.xpose.msrb.mxu0 %v2930_v29 }
  0xa4   : > { %912 = vmatpush.xpose.msrb.mxu2 %v2935_v30 }
  0xa7   : > { %737 = vmatmul.f32.vlgmr.msra.gmra.mxu0 %v719_v31  ;;  %796 = vmatmul.f32.vlgmr.msra.gmra.mxu2 %v778_v32 }
  0xa8   : > { %1028 = vmatpush.xpose.msra.mxu2 %v2941_v33  ;;  %970 = vmatpush.xpose.msra.mxu0 %v2944_v34 }
  0xac   : > { %1029 = vmatpush.xpose.msra.mxu2 %v2949_v35 }
  0xaf   : > { %854 = vmatmul.f32.vlgmr.msrb.gmra.mxu0 %v836_v36  ;;  %913 = vmatmul.f32.vlgmr.msrb.gmra.mxu2 %v895_v37 }
  0xb0   : > { %1145 = vmatpush.xpose.msrb.mxu2 %v2955_v38  ;;  %1087 = vmatpush.xpose.msrb.mxu0 %v2958_v39 }
  0xb4   : > { %1146 = vmatpush.xpose.msrb.mxu2 %v2963_v40 }
  0xb7   : > { %971 = vmatmul.f32.vlgmr.msra.gmra.mxu0 %v953_v41  ;;  %1030 = vmatmul.f32.vlgmr.msra.gmra.mxu2 %v1012_v42  ;;  %v277_v41 = vld [vmem:[%s3628_s3 + $0x38] sm:$0xff] }
  0xb8   : > { %1262 = vmatpush.xpose.msra.mxu2 %v2969_v43  ;;  %1204 = vmatpush.xpose.msra.mxu0 %v2972_v44  ;;  %v273_v42 = vld [vmem:[%s3628_s3 + $0x18] sm:$0xff] }
  0xb9   : > { %360 = vmatpush.msra.mxu3 %v277_v41 }
  0xbb   : > { %361 = vmatpush.msra.mxu3 %v273_v42 }
  0xbc   : > { %1263 = vmatpush.xpose.msra.mxu2 %v2977_v45  ;;  %2558 = vmatmul.msk.f32.vlgmr.msra.gmra.mxu3 %vm282_vm0, %v2852_v9 }
  0xbd   : > { %473 = vmatpush.msrb.mxu3 %v2864_v10 }
  0xbf   : > { %1088 = vmatmul.f32.vlgmr.msrb.gmra.mxu0 %v1070_v46  ;;  %1147 = vmatmul.f32.vlgmr.msrb.gmra.mxu2 %v1129_v47 }
  0xc0   : > { %474 = vmatpush.msrb.mxu3 %v2880_v12 }
  0xc2   : > { %592 = vmatpush.msra.mxu3 %v2884_v13 }
  0xc4   : > { %593 = vmatpush.msra.mxu3 %v2889_v15 }
  0xc7   : > { %1205 = vmatmul.f32.vlgmr.msra.gmra.mxu0 %v1187_v48  ;;  %1264 = vmatmul.f32.vlgmr.msra.gmra.mxu2 %v1246_v49 }
 0x10c   : > { %v2986_v51 = vpop.f32.mrf.mxu0 }
 0x10d   : > { %v388_v55 = vsel %vm387_vm2, %v2986_v51, -inf }
 0x112   : > { %v442_v52 = vpop.f32.mrf.mxu2 }
 0x113   : > { %v446_v53 = vsel %vm445_vm1, %v442_v52, -inf }
 0x114   : > { %447 = vmax.xlane.f32.xlu0 %v446_v53  ;;  %v2989_v54 = vpop.f32.mrf.mxu0 }
 0x115   : > { %v506_v61 = vsel %vm387_vm2, %v2989_v54, -inf }
 0x11a   : > { %v2993_v56 = vpop.f32.mrf.mxu2 }
 0x11b   : > { %v566_v57 = vsel %vm445_vm1, %v2993_v56, -inf }
 0x11c   : > { %567 = vmax.xlane.f32.xlu1 %v566_v57  ;;  %v2997_v58 = vpop.f32.mrf.mxu0  ;;  %389 = vmax.xlane.f32.xlu0 %v388_v55 }
 0x11d   : > { %v624_v0 = vsel %vm387_vm2, %v2997_v58, -inf }
 0x122   : > { %v2999_v59 = vpop.f32.mrf.mxu2 }
 0x123   : > { %v683_v60 = vsel %vm445_vm1, %v2999_v59, -inf }
 0x124   : > { %684 = vmax.xlane.f32.xlu2 %v683_v60  ;;  %v3005_v62 = vpop.f32.mrf.mxu0  ;;  %507 = vmax.xlane.f32.xlu1 %v506_v61 }
 0x125   : > { %v741_v1 = vsel %vm387_vm2, %v3005_v62, -inf }
 0x12a   : > { %v3007_v63 = vpop.f32.mrf.mxu2 }
 0x12b   : > { %v800_v2 = vsel %vm445_vm1, %v3007_v63, -inf }
 0x12c   : > { %v3015_v3 = vpop.f32.mrf.mxu0  ;;  %625 = vmax.xlane.f32.xlu2 %v624_v0  ;;  %742 = vmax.xlane.f32.xlu1 %v741_v1 }
 0x12d   : > { %801 = vmax.xlane.f32.xlu0 %v800_v2  ;;  %v858_v8 = vsel %vm387_vm2, %v3015_v3, -inf }
 0x132   : > { %v3020_v5 = vpop.f32.mrf.mxu2 }
 0x133   : > { %v917_v6 = vsel %vm445_vm1, %v3020_v5, -inf }
 0x134   : > { %v3024_v7 = vpop.f32.mrf.mxu0  ;;  %918 = vmax.xlane.f32.xlu2 %v917_v6 }
 0x135   : > { %859 = vmax.xlane.f32.xlu0 %v858_v8  ;;  %v975_v18 = vsel %vm387_vm2, %v3024_v7, -inf }
 0x13a   : > { %v3028_v14 = vpop.f32.mrf.mxu2 }
 0x13b   : > { %v1034_v19 = vsel %vm445_vm1, %v3028_v14, -inf }
 0x13c   : > { %976 = vmax.xlane.f32.xlu2 %v975_v18  ;;  %1035 = vmax.xlane.f32.xlu1 %v1034_v19  ;;  %v3034_v21 = vpop.f32.mrf.mxu0 }
 0x13d   : > { %v1092_v26 = vsel %vm387_vm2, %v3034_v21, -inf }
 0x142   : > { %v3036_v22 = vpop.f32.mrf.mxu2 }
 0x143   : > { %v1151_v27 = vsel %vm445_vm1, %v3036_v22, -inf }
 0x144   : > { %1093 = vmax.xlane.f32.xlu1 %v1092_v26  ;;  %1152 = vmax.xlane.f32.xlu0 %v1151_v27  ;;  %v3042_v31 = vpop.f32.mrf.mxu0 }
 0x145   : > { %v1209_v37 = vsel %vm387_vm2, %v3042_v31, -inf }
 0x14a   : > { %v3044_v32 = vpop.f32.mrf.mxu2 }
 0x14b   : > { %v1268_v36 = vsel %vm445_vm1, %v3044_v32, -inf }
 0x14c   : > { %1269 = vmax.xlane.f32.xlu2 %v1268_v36  ;;  %1210 = vmax.xlane.f32.xlu0 %v1209_v37 }
 0x187   : > { %v448_v46 = vpop.xlane.xlu0 %447 }
 0x188   : > { %v449_v47 = vsub.f32 %v442_v52, %v448_v46 }
 0x18a   : > { %v450_v48 = vmul.f32 1.442695, %v449_v47 }
 0x18c   : > { %2624 = vpow2.f32 %v450_v48 }
 0x18f   : > { %v568_v49 = vpop.xlane.xlu1 %567  ;;  %v390_v53 = vpop.xlane.xlu0 %389 }
 0x190   : > { %v569_v55 = vsub.f32 %v2993_v56, %v568_v49  ;;  %v391_v57 = vsub.f32 %v2986_v51, %v390_v53 }
 0x192   : > { %v2625_v9 = vpop.eup %2624  ;;  %v570_v60 = vmul.f32 1.442695, %v569_v55  ;;  %v392_v61 = vmul.f32 1.442695, %v391_v57 }
 0x193   : > { %2560 = vmatmul.msk.f32.vlgmr.msrb.gmra.mxu3 %vm455_vm3, %v2625_v9  ;;  %v452_v13 = vsel %vm445_vm1, %v2625_v9, 0.0 }
 0x194   : > { %2626 = vpow2.f32 %v570_v60  ;;  %453 = vadd.xlane.f32.xlu0 %v452_v13  ;;  %709 = vmatpush.msrb.mxu3 %v2893_v16 }
 0x195   : > { %2628 = vpow2.f32 %v392_v61 }
 0x196   : > { %710 = vmatpush.msrb.mxu3 %v2907_v20 }
 0x197   : > { %v685_v15 = vpop.xlane.xlu2 %684  ;;  %v508_v52 = vpop.xlane.xlu1 %507 }
 0x198   : > { %v686_v56 = vsub.f32 %v2999_v59, %v685_v15  ;;  %v509_v51 = vsub.f32 %v2989_v54, %v508_v52 }
 0x19a   : > { %v2627_v0 = vpop.eup %2626  ;;  %v687_v1 = vmul.f32 1.442695, %v686_v56  ;;  %v510_v2 = vmul.f32 1.442695, %v509_v51 }
 0x19b   : > { %v2629_v4 = vpop.eup %2628  ;;  %2565 = vmatmul.msk.f32.vlgmr.msra.gmra.mxu3 %vm455_vm3, %v2627_v0 }
 0x19c   : > { %2630 = vpow2.f32 %v687_v1  ;;  %2559 = vmatmul.msk.f32.vlgmr.msrb.gmra.mxu1 %vm397_vm4, %v2629_v4  ;;  %v394_v16 = vsel %vm387_vm2, %v2629_v4, 0.0  ;;  %826 = vmatpush.msra.mxu3 %v2913_v23  ;;  %v572_v23 = vsel %vm445_vm1, %v2627_v0, 0.0 }
 0x19d   : > { %2632 = vpow2.f32 %v510_v2  ;;  %395 = vadd.xlane.f32.xlu2 %v394_v16  ;;  %651 = vmatpush.msrb.mxu1 %v2896_v17 }
 0x19e   : > { %827 = vmatpush.msra.mxu3 %v2921_v25 }
 0x19f   : > { %v626_v20 = vpop.xlane.xlu2 %625  ;;  %v743_v59 = vpop.xlane.xlu1 %742 }
 0x1a0   : > { %v627_v54 = vsub.f32 %v2997_v58, %v626_v20  ;;  %v802_v6 = vpop.xlane.xlu0 %801  ;;  %v744_v27 = vsub.f32 %v3005_v62, %v743_v59 }
 0x1a1   : > { %v803_v8 = vsub.f32 %v3007_v63, %v802_v6  ;;  %v1428_v6 = vld [vmem:[%s3629_s4 + $0x1f8] sm:$0xff] }
 0x1a2   : > { %v2631_v18 = vpop.eup %2630  ;;  %v628_v19 = vmul.f32 1.442695, %v627_v54  ;;  %v745_v25 = vmul.f32 1.442695, %v744_v27  ;;  %v3127_v54 = vpop.f32.mrf.mxu3  ;;  %v1425_v27 = vld [vmem:[%s3629_s4 + $0x1e0] sm:$0xff] }
 0x1a3   : > { %v2633_v26 = vpop.eup %2632  ;;  %v804_v36 = vmul.f32 1.442695, %v803_v8  ;;  %2570 = vmatmul.msk.f32.vlgmr.msrb.gmra.mxu3 %vm455_vm3, %v2631_v18 }
 0x1a4   : > { %2634 = vpow2.f32 %v628_v19  ;;  %2562 = vmatmul.msk.f32.vlgmr.msra.gmra.mxu1 %vm397_vm4, %v2633_v26  ;;  %v512_v17 = vsel %vm387_vm2, %v2633_v26, 0.0  ;;  %943 = vmatpush.msrb.mxu3 %v2927_v28  ;;  %v1395_v19 = vld [vmem:[%s3629_s4 + $0xf0] sm:$0xff]  ;;  %v1396_v26 = vld [vmem:[%s3629_s4 + $0xf8] sm:$0xff] }
 0x1a5   : > { %513 = vadd.xlane.f32.xlu1 %v512_v17  ;;  %573 = vadd.xlane.f32.xlu2 %v572_v23  ;;  %2636 = vpow2.f32 %v804_v36  ;;  %v1426_v36 = vld [vmem:[%s3629_s4 + $0x1e8] sm:$0xff]  ;;  %v1393_v17 = vld [vmem:[%s3629_s4 + $0xe0] sm:$0xff]  ;;  %v1423_v23 = vld [vmem:[%s3629_s4 + $0x1d0] sm:$0xff] }
 0x1a6   : > { %768 = vmatpush.msra.mxu1 %v2916_v24  ;;  %944 = vmatpush.msrb.mxu3 %v2935_v30  ;;  %2638 = vpow2.f32 %v745_v25  ;;  %v689_v24 = vsel %vm445_vm1, %v2631_v18, 0.0  ;;  %v1394_v25 = vld [vmem:[%s3629_s4 + $0xe8] sm:$0xff] }
 0x1a7   : > { %v919_v58 = vpop.xlane.xlu2 %918  ;;  %1429 = vmatpush.msrb.mxu0 %v1395_v19  ;;  %1469 = vmatpush.msrb.mxu2 %v1396_v26  ;;  %v1374_v19 = vld [vmem:[%s3629_s4 + $0x48] sm:$0xff]  ;;  %v1404_v26 = vld [vmem:[%s3629_s4 + $0x138] sm:$0xff] }
 0x1a8   : > { %v920_v62 = vsub.f32 %v3020_v5, %v919_v58  ;;  %v860_v63 = vpop.xlane.xlu0 %859 }
 0x1a9   : > { %v861_v37 = vsub.f32 %v3015_v3, %v860_v63  ;;  %1430 = vmatpush.msrb.mxu0 %v1393_v17  ;;  %1470 = vmatpush.msrb.mxu2 %v1394_v25  ;;  %v1391_v63 = vld [vmem:[%s3629_s4 + $0xd0] sm:$0xff]  ;;  %v1401_v25 = vld [vmem:[%s3629_s4 + $0x120] sm:$0xff] }
 0x1aa   : > { %v2635_v41 = vpop.eup %2634  ;;  %v921_v42 = vmul.f32 1.442695, %v920_v62  ;;  %v1424_v62 = vld [vmem:[%s3629_s4 + $0x1d8] sm:$0xff] }
 0x1ab   : > { %v862_v46 = vmul.f32 1.442695, %v861_v37  ;;  %v630_v28 = vsel %vm387_vm2, %v2635_v41, 0.0  ;;  %v2637_v47 = vpop.eup %2636  ;;  %v1421_v37 = vld [vmem:[%s3629_s4 + $0x1c0] sm:$0xff]  ;;  %1431 = vmatpush.msrb.mxu0 %v1391_v63  ;;  %v1402_v63 = vld [vmem:[%s3629_s4 + $0x128] sm:$0xff] }
 0x1ac   : > { %2640 = vpow2.f32 %v921_v42  ;;  %2567 = vmatmul.msk.f32.vlgmr.msrb.gmra.mxu1 %vm397_vm4, %v2635_v41  ;;  %631 = vadd.xlane.f32.xlu0 %v630_v28  ;;  %v806_v30 = vsel %vm445_vm1, %v2637_v47, 0.0  ;;  %v2639_v53 = vpop.eup %2638  ;;  %v1392_v41 = vld [vmem:[%s3629_s4 + $0xd8] sm:$0xff]  ;;  %v1389_v28 = vld [vmem:[%s3629_s4 + $0xc0] sm:$0xff] }
 0x1ad   : > { %2642 = vpow2.f32 %v862_v46  ;;  %2575 = vmatmul.msk.f32.vlgmr.msra.gmra.mxu3 %vm455_vm3, %v2637_v47  ;;  %690 = vadd.xlane.f32.xlu1 %v689_v24  ;;  %v1422_v46 = vld [vmem:[%s3629_s4 + $0x1c8] sm:$0xff]  ;;  %v1419_v47 = vld [vmem:[%s3629_s4 + $0x1b0] sm:$0xff] }
 0x1ae   : > { %807 = vadd.xlane.f32.xlu2 %v806_v30  ;;  %885 = vmatpush.msrb.mxu1 %v2930_v29  ;;  %v747_v29 = vsel %vm387_vm2, %v2639_v53, 0.0  ;;  %v1390_v24 = vld [vmem:[%s3629_s4 + $0xc8] sm:$0xff]  ;;  %v1420_v30 = vld [vmem:[%s3629_s4 + $0x1b8] sm:$0xff] }
 0x1af   : > { %v977_v3 = vpop.xlane.xlu2 %976  ;;  %v1036_v5 = vpop.xlane.xlu1 %1035  ;;  %1060 = vmatpush.msra.mxu3 %v2941_v33  ;;  %1471 = vmatpush.msrb.mxu2 %v1392_v41  ;;  %v1369_v41 = vld [vmem:[%s3629_s4 + $0x20] sm:$0xff] }
 0x1b0   : > { %v978_v48 = vsub.f32 %v3024_v7, %v977_v3  ;;  %v1037_v49 = vsub.f32 %v3028_v14, %v1036_v5  ;;  %1432 = vmatpush.msrb.mxu0 %v1389_v28  ;;  %v1370_v28 = vld [vmem:[%s3629_s4 + $0x28] sm:$0xff] }
 0x1b1   : > { %1061 = vmatpush.msra.mxu3 %v2949_v35  ;;  %1472 = vmatpush.msrb.mxu2 %v1390_v24  ;;  %v1367_v24 = vld [vmem:[%s3629_s4 + $0x10] sm:$0xff] }
 0x1b2   : > { %v2641_v55 = vpop.eup %2640  ;;  %v979_v57 = vmul.f32 1.442695, %v978_v48  ;;  %v1038_v9 = vmul.f32 1.442695, %v1037_v49  ;;  %v1387_v48 = vld [vmem:[%s3629_s4 + $0xb0] sm:$0xff]  ;;  %v1388_v49 = vld [vmem:[%s3629_s4 + $0xb8] sm:$0xff] }
 0x1b3   : > { %v2643_v60 = vpop.eup %2642  ;;  %1433 = vmatpush.msrb.mxu0 %v1387_v48  ;;  %1473 = vmatpush.msrb.mxu2 %v1388_v49  ;;  %v1368_v48 = vld [vmem:[%s3629_s4 + $0x18] sm:$0xff]  ;;  %v1398_v49 = vld [vmem:[%s3629_s4 + $0x108] sm:$0xff] }
 0x1b4   : > { %2644 = vpow2.f32 %v979_v57  ;;  %2572 = vmatmul.msk.f32.vlgmr.msra.gmra.mxu1 %vm397_vm4, %v2639_v53  ;;  %v864_v61 = vsel %vm387_vm2, %v2643_v60, 0.0  ;;  %v1417_v53 = vld [vmem:[%s3629_s4 + $0x1a0] sm:$0xff] }
 0x1b5   : > { %2646 = vpow2.f32 %v1038_v9  ;;  %2580 = vmatmul.msk.f32.vlgmr.msrb.gmra.mxu3 %vm455_vm3, %v2641_v55  ;;  %748 = vadd.xlane.f32.xlu1 %v747_v29  ;;  %v1385_v57 = vld [vmem:[%s3629_s4 + $0xa0] sm:$0xff]  ;;  %v1415_v9 = vld [vmem:[%s3629_s4 + $0x190] sm:$0xff] }
 0x1b6   : > { %865 = vadd.xlane.f32.xlu0 %v864_v61  ;;  %1002 = vmatpush.msra.mxu1 %v2944_v34  ;;  %v923_v34 = vsel %vm445_vm1, %v2641_v55, 0.0  ;;  %v1418_v55 = vld [vmem:[%s3629_s4 + $0x1a8] sm:$0xff]  ;;  %v1416_v61 = vld [vmem:[%s3629_s4 + $0x198] sm:$0xff] }
 0x1b7   : > { %v1094_v33 = vpop.xlane.xlu1 %1093  ;;  %v1153_v35 = vpop.xlane.xlu0 %1152  ;;  %1177 = vmatpush.msrb.mxu3 %v2955_v38  ;;  %1434 = vmatpush.msrb.mxu0 %v1385_v57  ;;  %v1366_v57 = vld [vmem:[%s3629_s4 + $0x8] sm:$0xff] }
 0x1b8   : > { %v1095_v7 = vsub.f32 %v3034_v21, %v1094_v33  ;;  %v1154_v14 = vsub.f32 %v3036_v22, %v1153_v35  ;;  %v1383_v33 = vld [vmem:[%s3629_s4 + $0x90] sm:$0xff]  ;;  %v1413_v35 = vld [vmem:[%s3629_s4 + $0x180] sm:$0xff] }
 0x1b9   : > { %1178 = vmatpush.msrb.mxu3 %v2963_v40  ;;  %1435 = vmatpush.msrb.mxu0 %v1383_v33 }
 0x1ba   : > { %v2645_v13 = vpop.eup %2644  ;;  %v1096_v15 = vmul.f32 1.442695, %v1095_v7  ;;  %v1155_v52 = vmul.f32 1.442695, %v1154_v14  ;;  %v1384_v7 = vld [vmem:[%s3629_s4 + $0x98] sm:$0xff] }
 0x1bb   : > { %v2647_v56 = vpop.eup %2646  ;;  %v981_v51 = vsel %vm387_vm2, %v2645_v13, 0.0 }
 0x1bc   : > { %2648 = vpow2.f32 %v1096_v15  ;;  %2577 = vmatmul.msk.f32.vlgmr.msrb.gmra.mxu1 %vm397_vm4, %v2643_v60  ;;  %982 = vadd.xlane.f32.xlu2 %v981_v51  ;;  %v1040_v38 = vsel %vm445_vm1, %v2647_v56, 0.0  ;;  %v1386_v60 = vld [vmem:[%s3629_s4 + $0xa8] sm:$0xff] }
 0x1bd   : > { %2650 = vpow2.f32 %v1155_v52  ;;  %2585 = vmatmul.msk.f32.vlgmr.msra.gmra.mxu3 %vm455_vm3, %v2647_v56  ;;  %924 = vadd.xlane.f32.xlu1 %v923_v34  ;;  %v1414_v15 = vld [vmem:[%s3629_s4 + $0x188] sm:$0xff]  ;;  %v1381_v52 = vld [vmem:[%s3629_s4 + $0x80] sm:$0xff]  ;;  %v1411_v56 = vld [vmem:[%s3629_s4 + $0x170] sm:$0xff] }
 0x1be   : > { %1041 = vadd.xlane.f32.xlu0 %v1040_v38  ;;  %1119 = vmatpush.msrb.mxu1 %v2958_v39  ;;  %v1382_v51 = vld [vmem:[%s3629_s4 + $0x88] sm:$0xff]  ;;  %v1412_v34 = vld [vmem:[%s3629_s4 + $0x178] sm:$0xff] }
 0x1bf   : > { %v1270_v40 = vpop.xlane.xlu2 %1269  ;;  %v1211_v21 = vpop.xlane.xlu0 %1210  ;;  %1294 = vmatpush.msra.mxu3 %v2969_v43  ;;  %1474 = vmatpush.msrb.mxu2 %v1386_v60 }
 0x1c0   : > { %v1271_v22 = vsub.f32 %v3044_v32, %v1270_v40  ;;  %v1212_v0 = vsub.f32 %v3042_v31, %v1211_v21  ;;  %1436 = vmatpush.msrb.mxu0 %v1381_v52  ;;  %v1379_v21 = vld [vmem:[%s3629_s4 + $0x70] sm:$0xff] }
 0x1c1   : > { %1295 = vmatpush.msra.mxu3 %v2977_v45  ;;  %1475 = vmatpush.msrb.mxu2 %v1384_v7 }
 0x1c2   : > { %v2649_v1 = vpop.eup %2648  ;;  %v1272_v2 = vmul.f32 1.442695, %v1271_v22  ;;  %v1213_v4 = vmul.f32 1.442695, %v1212_v0  ;;  %v1409_v22 = vld [vmem:[%s3629_s4 + $0x160] sm:$0xff]  ;;  %v1380_v0 = vld [vmem:[%s3629_s4 + $0x78] sm:$0xff]  ;;  %1437 = vmatpush.msrb.mxu0 %v1379_v21 }
 0x1c3   : > { %v2651_v16 = vpop.eup %2650  ;;  %v1098_v20 = vsel %vm387_vm2, %v2649_v1, 0.0  ;;  %1476 = vmatpush.msrb.mxu2 %v1382_v51 }
 0x1c4   : > { %2652 = vpow2.f32 %v1272_v2  ;;  %2582 = vmatmul.msk.f32.vlgmr.msra.gmra.mxu1 %vm397_vm4, %v2645_v13  ;;  %v1157_v39 = vsel %vm445_vm1, %v2651_v16, 0.0  ;;  %v1377_v2 = vld [vmem:[%s3629_s4 + $0x60] sm:$0xff] }
 0x1c5   : > { %2654 = vpow2.f32 %v1213_v4  ;;  %2590 = vmatmul.msk.f32.vlgmr.msrb.gmra.mxu3 %vm455_vm3, %v2651_v16  ;;  %1099 = vadd.xlane.f32.xlu1 %v1098_v20  ;;  %v1407_v4 = vld [vmem:[%s3629_s4 + $0x150] sm:$0xff]  ;;  %v1378_v16 = vld [vmem:[%s3629_s4 + $0x68] sm:$0xff] }
 0x1c6   : > { %1158 = vadd.xlane.f32.xlu2 %v1157_v39  ;;  %1236 = vmatpush.msra.mxu1 %v2972_v44  ;;  %v1427_v44 = vld [vmem:[%s3629_s4 + $0x1f0] sm:$0xff]  ;;  %v1408_v39 = vld [vmem:[%s3629_s4 + $0x158] sm:$0xff] }
 0x1c7   : > { %1489 = vmatpush.msrb.mxu3 %v1428_v6  ;;  %1477 = vmatpush.msrb.mxu2 %v1380_v0  ;;  %v1403_v6 = vld [vmem:[%s3629_s4 + $0x130] sm:$0xff] }
 0x1c8   : > { %1438 = vmatpush.msrb.mxu0 %v1377_v2 }
 0x1c9   : > { %1490 = vmatpush.msrb.mxu3 %v1426_v36  ;;  %1478 = vmatpush.msrb.mxu2 %v1378_v16 }
 0x1ca   : > { %v2653_v43 = vpop.eup %2652 }
 0x1cb   : > { %v2655_v45 = vpop.eup %2654  ;;  %v1274_v31 = vsel %vm445_vm1, %v2653_v43, 0.0  ;;  %1491 = vmatpush.msrb.mxu3 %v1424_v62  ;;  %v1372_v62 = vld [vmem:[%s3629_s4 + $0x38] sm:$0xff] }
 0x1cc   : > { %2587 = vmatmul.msk.f32.vlgmr.msrb.gmra.mxu1 %vm397_vm4, %v2649_v1  ;;  %v1215_v32 = vsel %vm387_vm2, %v2655_v45, 0.0  ;;  %v1410_v1 = vld [vmem:[%s3629_s4 + $0x168] sm:$0xff] }
 0x1cd   : > { %2595 = vmatmul.msk.f32.vlgmr.msra.gmra.mxu3 %vm455_vm3, %v2653_v43  ;;  %1275 = vadd.xlane.f32.xlu1 %v1274_v31  ;;  %v1375_v43 = vld [vmem:[%s3629_s4 + $0x50] sm:$0xff]  ;;  %v1376_v31 = vld [vmem:[%s3629_s4 + $0x58] sm:$0xff] }
 0x1ce   : > { %1216 = vadd.xlane.f32.xlu0 %v1215_v32  ;;  %1449 = vmatpush.msrb.mxu1 %v1427_v44  ;;  %v1406_v32 = vld [vmem:[%s3629_s4 + $0x148] sm:$0xff]  ;;  %v1373_v44 = vld [vmem:[%s3629_s4 + $0x40] sm:$0xff] }
 0x1cf   : > { %1492 = vmatpush.msrb.mxu3 %v1422_v46  ;;  %1439 = vmatpush.msrb.mxu0 %v1375_v43  ;;  %v1399_v46 = vld [vmem:[%s3629_s4 + $0x110] sm:$0xff] }
 0x1d0   : > { %1450 = vmatpush.msrb.mxu1 %v1425_v27  ;;  %1479 = vmatpush.msrb.mxu2 %v1376_v31 }
 0x1d1   : > { %1493 = vmatpush.msrb.mxu3 %v1420_v30  ;;  %1440 = vmatpush.msrb.mxu0 %v1373_v44  ;;  %v1397_v30 = vld [vmem:[%s3629_s4 + $0x100] sm:$0xff] }
 0x1d2   : > { %1451 = vmatpush.msrb.mxu1 %v1423_v23  ;;  %1480 = vmatpush.msrb.mxu2 %v1374_v19  ;;  %v1371_v23 = vld [vmem:[%s3629_s4 + $0x30] sm:$0xff] }
 0x1d3   : > { %1494 = vmatpush.msrb.mxu3 %v1418_v55  ;;  %1441 = vmatpush.msrb.mxu0 %v1371_v23  ;;  %v1365_v55 = vld [vmem:[%s3629_s4] sm:$0xff] }
 0x1d4   : > { %2592 = vmatmul.msk.f32.vlgmr.msra.gmra.mxu1 %vm397_vm4, %v2655_v45  ;;  %v1405_v45 = vld [vmem:[%s3629_s4 + $0x140] sm:$0xff]  ;;  %1481 = vmatpush.msrb.mxu2 %v1372_v62 }
 0x1d5   : > { %1452 = vmatpush.msrb.mxu1 %v1421_v37  ;;  %1495 = vmatpush.msrb.mxu3 %v1416_v61 }
 0x1d6   : > { %1442 = vmatpush.msrb.mxu0 %v1369_v41  ;;  %1482 = vmatpush.msrb.mxu2 %v1370_v28 }
 0x1d7   : > { %1453 = vmatpush.msrb.mxu1 %v1419_v47  ;;  %1496 = vmatpush.msrb.mxu3 %v1414_v15  ;;  %v1400_v47 = vld [vmem:[%s3629_s4 + $0x118] sm:$0xff] }
 0x1d8   : > { %1443 = vmatpush.msrb.mxu0 %v1367_v24  ;;  %1483 = vmatpush.msrb.mxu2 %v1368_v48 }
 0x1d9   : > { %1454 = vmatpush.msrb.mxu1 %v1417_v53  ;;  %1497 = vmatpush.msrb.mxu3 %v1412_v34 }
 0x1da   : > { %1444 = vmatpush.msrb.mxu0 %v1365_v55  ;;  %1484 = vmatpush.msrb.mxu2 %v1366_v57 }
 0x1db   : > { %1455 = vmatpush.msrb.mxu1 %v1415_v9  ;;  %1498 = vmatpush.msrb.mxu3 %v1410_v1 }
 0x1dc   : > { %1525 = vmatpush.xpose.msra.mxu0 %v2864_v10  ;;  %1580 = vmatpush.xpose.msra.mxu2 %v2872_v11 }
 0x1dd   : > { %1456 = vmatpush.msrb.mxu1 %v1413_v35  ;;  %1499 = vmatpush.msrb.mxu3 %v1408_v39 }
 0x1df   : > { %1457 = vmatpush.msrb.mxu1 %v1411_v56  ;;  %1500 = vmatpush.msrb.mxu3 %v1406_v32 }
 0x1e0   : > { %1526 = vmatpush.xpose.msra.mxu0 %v2880_v12 }
 0x1e1   : > { %1458 = vmatpush.msrb.mxu1 %v1409_v22  ;;  %1501 = vmatpush.msrb.mxu3 %v1404_v26 }
 0x1e3   : > { %1459 = vmatpush.msrb.mxu1 %v1407_v4  ;;  %1502 = vmatpush.msrb.mxu3 %v1402_v63 }
 0x1e5   : > { %1460 = vmatpush.msrb.mxu1 %v1405_v45  ;;  %1503 = vmatpush.msrb.mxu3 %v1400_v47 }
 0x1e7   : > { %1461 = vmatpush.msrb.mxu1 %v1403_v6  ;;  %1504 = vmatpush.msrb.mxu3 %v1398_v49 }
 0x1e9   : > { %1462 = vmatpush.msrb.mxu1 %v1401_v25  ;;  %1612 = vmatpush.msra.mxu3 %v2872_v11 }
 0x1eb   : > { %1463 = vmatpush.msrb.mxu1 %v1399_v46 }
 0x1ed   : > { %1464 = vmatpush.msrb.mxu1 %v1397_v30 }
 0x1ef   : > { %1557 = vmatpush.msra.mxu1 %v2864_v10 }
 0x1f1   : > { %1558 = vmatpush.msra.mxu1 %v2880_v12 }
 0x207   : > { %v3218_v29 = vpop.xlane.xlu0 %453 }
 0x208   : > { %2656 = vrcp.f32 %v3218_v29 }
 0x20e   : > { %v2657_v33 = vpop.eup %2656 }
 0x210   : > { %v3162_v58 = vpop.xlane.xlu2 %395 }
 0x211   : > { %2658 = vrcp.f32 %v3162_v58 }
 0x216   : > { %v3129_v59 = vpop.f32.mrf.mxu3 }
 0x217   : > { %v2659_v58 = vpop.eup %2658  ;;  %v480_v6 = vmul.f32 %v2657_v33, %v3129_v59 }
 0x218   : > { %v3137_v8 = vpop.xlane.xlu1 %513  ;;  %v3232_v14 = vpop.xlane.xlu2 %573 }
 0x219   : > { %v3139_v18 = vpop.f32.mrf.mxu1  ;;  %2660 = vrcp.f32 %v3137_v8 }
 0x21a   : > { %2662 = vrcp.f32 %v3232_v14 }
 0x21e   : > { %v3176_v42 = vpop.f32.mrf.mxu3 }
 0x21f   : > { %v3276_v20 = vpop.xlane.xlu0 %631  ;;  %v2661_v35 = vpop.eup %2660 }
 0x220   : > { %v3193_v3 = vpop.xlane.xlu1 %690  ;;  %2664 = vrcp.f32 %v3276_v20  ;;  %v2663_v7 = vpop.eup %2662 }
 0x221   : > { %v3195_v5 = vpop.f32.mrf.mxu1  ;;  %v808_v27 = vpop.xlane.xlu2 %807  ;;  %2666 = vrcp.f32 %v3193_v3  ;;  %v599_v56 = vmul.f32 %v2663_v7, %v3176_v42 }
 0x222   : > { %2668 = vrcp.f32 %v808_v27  ;;  %v539_v34 = vmul.f32 %v2661_v35, %v3195_v5  ;;  %v422_v27 = vmul.f32 %v2659_v58, %v3139_v18 }
 0x223   : > { %v1305_v39 = vrot.slane %v599_v56, 7 }
 0x224   : > { %v1304_v31 = vrot.slane %v539_v34, 7 }
 0x225   : > { %v1346_v63 = vsel %vm1344_vm5, %v480_v6, %v1305_v39  ;;  %v3421_v39 = vld [vmem:[%s2869_s28 + $0x18] sm:$0xff]  ;;  %v3444_v6 = vld [vmem:[%s2857_s23 + $0x50] sm:$0xff] }
 0x226   : > { %v3234_v13 = vpop.f32.mrf.mxu3  ;;  %v2665_v15 = vpop.eup %2664 }
 0x227   : > { %v2667_v52 = vpop.eup %2666 }
 0x228   : > { %v3251_v38 = vpop.xlane.xlu1 %748  ;;  %v2669_v12 = vpop.eup %2668  ;;  %v716_v22 = vmul.f32 %v2667_v52, %v3234_v13  ;;  %v2753_v52 = vld [vmem:[%s2869_s28 + $0x8] sm:$0xff] }
 0x229   : > { %v3253_v40 = vpop.f32.mrf.mxu1  ;;  %v866_v53 = vpop.xlane.xlu0 %865  ;;  %2670 = vrcp.f32 %v3251_v38 }
 0x22a   : > { %v657_v4 = vmul.f32 %v2665_v15, %v3253_v40  ;;  %v1311_v19 = vrot.slane %v716_v22, 6  ;;  %v2752_v15 = vld [vmem:[%s2857_s23 + $0x18] sm:$0xff]  ;;  %v3394_v22 = vld [vmem:[%s2857_s23 + $0x28] sm:$0xff] }
 0x22c   : > { %v1349_v59 = vsel %vm1347_vm6, %v1346_v63, %v1311_v19  ;;  %v3472_v63 = vld [vmem:[%s2857_s23 + $0x70] sm:$0xff] }
 0x22f   : > { %v983_v9 = vpop.xlane.xlu2 %982  ;;  %v2671_v3 = vpop.eup %2670 }
 0x230   : > { %v3305_v36 = vpop.f32.mrf.mxu3  ;;  %v925_v37 = vpop.xlane.xlu1 %924 }
 0x231   : > { %v3307_v17 = vpop.f32.mrf.mxu1  ;;  %v1042_v10 = vpop.xlane.xlu0 %1041  ;;  %2672 = vrcp.f32 %v925_v37  ;;  %v833_v16 = vmul.f32 %v2669_v12, %v3305_v36  ;;  %v1310_v36 = vrot.slane %v657_v4, 6  ;;  %v1345_v37 = vsel %vm1344_vm5, %v422_v27, %v1304_v31  ;;  %v2754_v12 = vld [vmem:[%s2857_s23 + $0x10] sm:$0xff] }
 0x232   : > { %2674 = vrcp.f32 %v866_v53  ;;  %v774_v43 = vmul.f32 %v2671_v3, %v3307_v17  ;;  %v3407_v4 = vld [vmem:[%s2869_s28 + $0x10] sm:$0xff] }
 0x233   : > { %2676 = vrcp.f32 %v983_v9  ;;  %v1317_v23 = vrot.slane %v833_v16, 5  ;;  %v1348_v48 = vsel %vm1347_vm6, %v1345_v37, %v1310_v36  ;;  %v3411_v16 = vld [vmem:[%s2857_s23 + $0x38] sm:$0xff]  ;;  %v3458_v36 = vld [vmem:[%s2857_s23 + $0x60] sm:$0xff] }
 0x234   : > { %2678 = vrcp.f32 %v1042_v10  ;;  %v1316_v62 = vrot.slane %v774_v43, 5  ;;  %v3425_v43 = vld [vmem:[%s2857_s23 + $0x48] sm:$0xff] }
 0x235   : > { %v1352_v49 = vsel %vm1350_vm7, %v1349_v59, %v1317_v23 }
 0x236   : > { %v1351_v9 = vsel %vm1350_vm7, %v1348_v48, %v1316_v62  ;;  %v3467_v62 = vld [vmem:[%s2857_s23 + $0x78] sm:$0xff] }
 0x237   : > { %v2673_v51 = vpop.eup %2672 }
 0x238   : > { %v946_v60 = vpop.f32.mrf.mxu3  ;;  %v1100_v29 = vpop.xlane.xlu1 %1099 }
 0x239   : > { %v887_v61 = vpop.f32.mrf.mxu1  ;;  %v1159_v14 = vpop.xlane.xlu2 %1158  ;;  %v950_v5 = vmul.f32 %v2673_v51, %v946_v60 }
 0x23a   : > { %2680 = vrcp.f32 %v1159_v14  ;;  %v2675_v21 = vpop.eup %2674 }
 0x23b   : > { %2682 = vrcp.f32 %v1100_v29  ;;  %v2677_v2 = vpop.eup %2676  ;;  %v891_v32 = vmul.f32 %v2675_v21, %v887_v61  ;;  %v1323_v17 = vrot.slane %v950_v5, 4 }
 0x23c   : > { %v2679_v42 = vpop.eup %2678 }
 0x23d   : > { %v1322_v41 = vrot.slane %v891_v32, 4  ;;  %v1355_v60 = vsel %vm1353_vm8, %v1352_v49, %v1323_v17  ;;  %v3435_v32 = vld [vmem:[%s2869_s28 + $0x20] sm:$0xff] }
 0x23f   : > { %v1354_v29 = vsel %vm1353_vm8, %v1351_v9, %v1322_v41  ;;  %v3477_v41 = vld [vmem:[%s2869_s28 + $0x38] sm:$0xff] }
 0x240   : > { %v1063_v11 = vpop.f32.mrf.mxu3  ;;  %v1276_v38 = vpop.xlane.xlu1 %1275 }
 0x241   : > { %v1004_v8 = vpop.f32.mrf.mxu1  ;;  %v1217_v0 = vpop.xlane.xlu0 %1216  ;;  %2684 = vrcp.f32 %v1276_v38  ;;  %v1067_v13 = vmul.f32 %v2679_v42, %v1063_v11 }
 0x242   : > { %v2681_v45 = vpop.eup %2680  ;;  %2686 = vrcp.f32 %v1217_v0  ;;  %v1008_v40 = vmul.f32 %v2677_v2, %v1004_v8  ;;  %v3401_v2 = vld [vmem:[%s2857_s23 + $0x20] sm:$0xff] }
 0x243   : > { %v2683_v44 = vpop.eup %2682  ;;  %v1329_v46 = vrot.slane %v1067_v13, 3  ;;  %v3439_v13 = vld [vmem:[%s2857_s23 + $0x58] sm:$0xff] }
 0x244   : > { %v1328_v47 = vrot.slane %v1008_v40, 3  ;;  %v3449_v40 = vld [vmem:[%s2869_s28 + $0x28] sm:$0xff] }
 0x245   : > { %v1358_v33 = vsel %vm1356_vm9, %v1355_v60, %v1329_v46 }
 0x246   : > { %v1357_v10 = vsel %vm1356_vm9, %v1354_v29, %v1328_v47 }
 0x247   : > { %v2685_v28 = vpop.eup %2684 }
 0x248   : > { %v1180_v1 = vpop.f32.mrf.mxu3  ;;  %v2687_v30 = vpop.eup %2686 }
 0x249   : > { %v1121_v20 = vpop.f32.mrf.mxu1  ;;  %v1184_v26 = vmul.f32 %v2681_v45, %v1180_v1  ;;  %v3430_v45 = vld [vmem:[%s2857_s23 + $0x40] sm:$0xff] }
 0x24a   : > { %v1125_v25 = vmul.f32 %v2683_v44, %v1121_v20  ;;  %v3416_v20 = vld [vmem:[%s2857_s23 + $0x30] sm:$0xff] }
 0x24b   : > { %v1335_v24 = vrot.slane %v1184_v26, 2  ;;  %v3453_v26 = vld [vmem:[%s2857_s23 + $0x68] sm:$0xff]  ;;  %s2615_s23 = sshll.u32 %s3632_s19, 4 }
 0x24c   : > { %v1334_v53 = vrot.slane %v1125_v25, 2  ;;  %v3463_v25 = vld [vmem:[%s2869_s28 + $0x30] sm:$0xff]  ;;  %s268_s19 = scalar_lea.vmem %s3630_s5, %s2615_s23 }
 0x24d   : > { %v1361_v11 = vsel %vm1359_vm10, %v1358_v33, %v1335_v24 }
 0x24e   : > { %v1360_v8 = vsel %vm1359_vm10, %v1357_v10, %v1334_v53 }
 0x250   : > { %v1297_v18 = vpop.f32.mrf.mxu3 }
 0x251   : > { %v1301_v55 = vmul.f32 %v2685_v28, %v1297_v18  ;;  %v1238_v57 = vpop.f32.mrf.mxu1 }
 0x252   : > { %v1242_v61 = vmul.f32 %v2687_v30, %v1238_v57 }
 0x253   : > { %v1341_v58 = vrot.slane %v1301_v55, 1 }
 0x254   : > { %v1340_v35 = vrot.slane %v1242_v61, 1 }
 0x255   : > { %v1364_v7 = vsel %vm1362_vm11, %v1361_v11, %v1341_v58 }
 0x256   : > { %1465 = vmatmul.f32.vlgmr.msrb.gmra.mxu1 %v1364_v7  ;;  %1505 = vmatmul.f32.vlgmr.msrb.gmra.mxu3 %v1364_v7  ;;  %v1363_v14 = vsel %vm1362_vm11, %v1360_v8, %v1340_v35 }
 0x257   : > { %1445 = vmatmul.f32.vlgmr.msrb.gmra.mxu0 %v1363_v14  ;;  %1485 = vmatmul.f32.vlgmr.msrb.gmra.mxu2 %v1363_v14 }
 0x258   : > { %1636 = vmatpush.xpose.msrb.mxu0 %v2752_v15  ;;  %1694 = vmatpush.xpose.msrb.mxu2 %v2753_v52 }
 0x259   : > { %1726 = vmatpush.msrb.mxu3 %v2753_v52  ;;  %1668 = vmatpush.msrb.mxu1 %v2752_v15 }
 0x25b   : > { %1669 = vmatpush.msrb.mxu1 %v2754_v12 }
 0x25c   : > { %1637 = vmatpush.xpose.msrb.mxu0 %v2754_v12 }
 0x2d3   : > { %v1466_v3 = vpop.f32.mrf.mxu1 }
 0x2d4   : > { %v1446_v56 = vpop.f32.mrf.mxu0 }
 0x2d5   : > { %v1467_v51 = vadd.f32 %v1466_v3, %v1446_v56 }
 0x2d7   : > { %v3390_v34 = vadd.f32 %v1467_v51, %v2984_v50 }
 0x2d9   : > { %1527 = vmatmul.f32.vlgmr.msra.gmra.mxu0 %v3390_v34  ;;  %v1506_v38 = vpop.f32.mrf.mxu3  ;;  %v1620_v50 = vrot.slane %v3390_v34, 1  ;;  %v1733_v42 = vrot.slane %v3390_v34, 2  ;;  %v1845_v31 = vrot.slane %v3390_v34, 3  ;;  %v1957_v19 = vrot.slane %v3390_v34, 4 }
 0x2da   : > { %v1486_v21 = vpop.f32.mrf.mxu2  ;;  %1749 = vmatpush.xpose.msra.mxu0 %v3394_v22  ;;  %v2069_v23 = vrot.slane %v3390_v34, 5  ;;  %v2181_v37 = vrot.slane %v3390_v34, 6  ;;  %v2293_v28 = vrot.slane %v3390_v34, 7 }
 0x2db   : > { %v1507_v0 = vadd.f32 %v1506_v38, %v1486_v21 }
 0x2dd   : > { %v3398_v1 = vadd.f32 %v1507_v0, %v3127_v54 }
 0x2de   : > { %1750 = vmatpush.xpose.msra.mxu0 %v3401_v2 }
 0x2df   : > { %1581 = vmatmul.f32.vlgmr.msra.gmra.mxu2 %v3398_v1  ;;  %v1677_v54 = vrot.slane %v3398_v1, 1  ;;  %v1789_v5 = vrot.slane %v3398_v1, 2  ;;  %v1901_v44 = vrot.slane %v3398_v1, 3  ;;  %v2013_v27 = vrot.slane %v3398_v1, 4 }
 0x2e0   : > { %1806 = vmatpush.xpose.msra.mxu2 %v3407_v4  ;;  %v2125_v17 = vrot.slane %v3398_v1, 5  ;;  %v2237_v46 = vrot.slane %v3398_v1, 6  ;;  %v2349_v59 = vrot.slane %v3398_v1, 7 }
 0x2e1   : > { %1638 = vmatmul.f32.vlgmr.msrb.gmra.mxu0 %v1620_v50 }
 0x2e2   : > { %1861 = vmatpush.xpose.msrb.mxu0 %v3411_v16 }
 0x2e6   : > { %1862 = vmatpush.xpose.msrb.mxu0 %v3416_v20 }
 0x2e7   : > { %1695 = vmatmul.f32.vlgmr.msrb.gmra.mxu2 %v1677_v54 }
 0x2e8   : > { %1918 = vmatpush.xpose.msrb.mxu2 %v3421_v39 }
 0x2e9   : > { %1751 = vmatmul.f32.vlgmr.msra.gmra.mxu0 %v1733_v42 }
 0x2ea   : > { %1973 = vmatpush.xpose.msra.mxu0 %v3425_v43 }
 0x2ee   : > { %1974 = vmatpush.xpose.msra.mxu0 %v3430_v45 }
 0x2ef   : > { %1807 = vmatmul.f32.vlgmr.msra.gmra.mxu2 %v1789_v5 }
 0x2f0   : > { %2030 = vmatpush.xpose.msra.mxu2 %v3435_v32 }
 0x2f1   : > { %1863 = vmatmul.f32.vlgmr.msrb.gmra.mxu0 %v1845_v31 }
 0x2f2   : > { %2085 = vmatpush.xpose.msrb.mxu0 %v3439_v13 }
 0x2f6   : > { %2086 = vmatpush.xpose.msrb.mxu0 %v3444_v6 }
 0x2f7   : > { %1919 = vmatmul.f32.vlgmr.msrb.gmra.mxu2 %v1901_v44 }
 0x2f8   : > { %2142 = vmatpush.xpose.msrb.mxu2 %v3449_v40 }
 0x2f9   : > { %1975 = vmatmul.f32.vlgmr.msra.gmra.mxu0 %v1957_v19 }
 0x2fa   : > { %2197 = vmatpush.xpose.msra.mxu0 %v3453_v26 }
 0x2fe   : > { %2198 = vmatpush.xpose.msra.mxu0 %v3458_v36 }
 0x2ff   : > { %2031 = vmatmul.f32.vlgmr.msra.gmra.mxu2 %v2013_v27 }
 0x300   : > { %2254 = vmatpush.xpose.msra.mxu2 %v3463_v25 }
 0x301   : > { %2087 = vmatmul.f32.vlgmr.msrb.gmra.mxu0 %v2069_v23 }
 0x302   : > { %2309 = vmatpush.xpose.msrb.mxu0 %v3467_v62 }
 0x306   : > { %2310 = vmatpush.xpose.msrb.mxu0 %v3472_v63 }
 0x307   : > { %2143 = vmatmul.f32.vlgmr.msrb.gmra.mxu2 %v2125_v17 }
 0x308   : > { %2366 = vmatpush.xpose.msrb.mxu2 %v3477_v41 }
 0x309   : > { %2199 = vmatmul.f32.vlgmr.msra.gmra.mxu0 %v2181_v37 }
 0x30f   : > { %2255 = vmatmul.f32.vlgmr.msra.gmra.mxu2 %v2237_v46 }
 0x311   : > { %2311 = vmatmul.f32.vlgmr.msrb.gmra.mxu0 %v2293_v28 }
 0x317   : > { %2367 = vmatmul.f32.vlgmr.msrb.gmra.mxu2 %v2349_v59 }
 0x356   : > { %v1528_v47 = vpop.f32.mrf.mxu0 }
 0x357   : > { %v1531_v24 = vsel %vm445_vm1, %v1528_v47, -inf }
 0x358   : > { %1532 = vmax.xlane.f32.xlu0 %v1531_v24 }
 0x35e   : > { %v3484_v18 = vpop.f32.mrf.mxu0 }
 0x35f   : > { %v1642_v57 = vsel %vm445_vm1, %v3484_v18, -inf }
 0x362   : > { %v1582_v30 = vpop.f32.mrf.mxu2 }
 0x363   : > { %v1585_v48 = vsel %vm387_vm2, %v1582_v30, -inf }
 0x364   : > { %1586 = vmax.xlane.f32.xlu2 %v1585_v48 }
 0x366   : > { %v3487_v49 = vpop.f32.mrf.mxu0 }
 0x367   : > { %v1755_v61 = vsel %vm445_vm1, %v3487_v49, -inf }
 0x36a   : > { %v1696_v53 = vpop.f32.mrf.mxu2 }
 0x36b   : > { %v1699_v55 = vsel %vm387_vm2, %v1696_v53, -inf }
 0x36c   : > { %1700 = vmax.xlane.f32.xlu1 %v1699_v55  ;;  %1643 = vmax.xlane.f32.xlu2 %v1642_v57 }
 0x36e   : > { %v3492_v9 = vpop.f32.mrf.mxu0 }
 0x36f   : > { %v1867_v11 = vsel %vm445_vm1, %v3492_v9, -inf }
 0x372   : > { %v3494_v60 = vpop.f32.mrf.mxu2 }
 0x373   : > { %v1811_v29 = vsel %vm387_vm2, %v3494_v60, -inf }
 0x374   : > { %1756 = vmax.xlane.f32.xlu1 %v1755_v61  ;;  %1812 = vmax.xlane.f32.xlu0 %v1811_v29 }
 0x376   : > { %v3500_v33 = vpop.f32.mrf.mxu0 }
 0x377   : > { %v1979_v7 = vsel %vm445_vm1, %v3500_v33, -inf }
 0x37a   : > { %v3502_v58 = vpop.f32.mrf.mxu2 }
 0x37b   : > { %v1923_v10 = vsel %vm387_vm2, %v3502_v58, -inf }
 0x37c   : > { %1924 = vmax.xlane.f32.xlu2 %v1923_v10  ;;  %1868 = vmax.xlane.f32.xlu0 %v1867_v11 }
 0x37e   : > { %v3514_v14 = vpop.f32.mrf.mxu0 }
 0x37f   : > { %v2091_v52 = vsel %vm445_vm1, %v3514_v14, -inf }
 0x382   : > { %v3508_v35 = vpop.f32.mrf.mxu2 }
 0x383   : > { %v2035_v8 = vsel %vm387_vm2, %v3508_v35, -inf }
 0x384   : > { %2036 = vmax.xlane.f32.xlu1 %v2035_v8  ;;  %1980 = vmax.xlane.f32.xlu2 %v1979_v7 }
 0x386   : > { %v3522_v3 = vpop.f32.mrf.mxu0 }
 0x387   : > { %v2203_v34 = vsel %vm445_vm1, %v3522_v3, -inf }
 0x38a   : > { %v3516_v15 = vpop.f32.mrf.mxu2 }
 0x38b   : > { %v2147_v12 = vsel %vm387_vm2, %v3516_v15, -inf }
 0x38c   : > { %2092 = vmax.xlane.f32.xlu1 %v2091_v52  ;;  %2148 = vmax.xlane.f32.xlu0 %v2147_v12 }
 0x38e   : > { %v3530_v38 = vpop.f32.mrf.mxu0 }
 0x38f   : > { %v2315_v1 = vsel %vm445_vm1, %v3530_v38, -inf }
 0x392   : > { %v3524_v56 = vpop.f32.mrf.mxu2 }
 0x393   : > { %v2259_v51 = vsel %vm387_vm2, %v3524_v56, -inf }
 0x394   : > { %2260 = vmax.xlane.f32.xlu2 %v2259_v51  ;;  %2204 = vmax.xlane.f32.xlu0 %v2203_v34 }
 0x39a   : > { %v3532_v21 = vpop.f32.mrf.mxu2 }
 0x39b   : > { %v2371_v0 = vsel %vm387_vm2, %v3532_v21, -inf }
 0x39c   : > { %2372 = vmax.xlane.f32.xlu1 %v2371_v0  ;;  %2316 = vmax.xlane.f32.xlu2 %v2315_v1 }
 0x3cb   : > { %v1533_v50 = vpop.xlane.xlu0 %1532 }
 0x3cc   : > { %v1534_v54 = vsub.f32 %v1528_v47, %v1533_v50 }
 0x3ce   : > { %v1535_v42 = vmul.f32 1.442695, %v1534_v54 }
 0x3d0   : > { %2688 = vpow2.f32 %v1535_v42 }
 0x3d6   : > { %v2689_v5 = vpop.eup %2688 }
 0x3d7   : > { %v1587_v31 = vpop.xlane.xlu2 %1586  ;;  %2596 = vmatmul.msk.f32.vlgmr.msra.gmra.mxu1 %vm455_vm3, %v2689_v5  ;;  %v1537_v44 = vsel %vm445_vm1, %v2689_v5, 0.0 }
 0x3d8   : > { %v1588_v19 = vsub.f32 %v1582_v30, %v1587_v31  ;;  %1538 = vadd.xlane.f32.xlu1 %v1537_v44  ;;  %1781 = vmatpush.msra.mxu1 %v3394_v22 }
 0x3da   : > { %v1589_v27 = vmul.f32 1.442695, %v1588_v19  ;;  %1782 = vmatpush.msra.mxu1 %v3401_v2 }
 0x3dc   : > { %2690 = vpow2.f32 %v1589_v27 }
 0x3df   : > { %v1701_v23 = vpop.xlane.xlu1 %1700  ;;  %v1644_v17 = vpop.xlane.xlu2 %1643 }
 0x3e0   : > { %v1702_v37 = vsub.f32 %v1696_v53, %v1701_v23  ;;  %v1645_v46 = vsub.f32 %v3484_v18, %v1644_v17 }
 0x3e2   : > { %v2691_v28 = vpop.eup %2690  ;;  %v1703_v59 = vmul.f32 1.442695, %v1702_v37  ;;  %v1646_v47 = vmul.f32 1.442695, %v1645_v46 }
 0x3e3   : > { %2597 = vmatmul.msk.f32.vlgmr.msra.gmra.mxu3 %vm397_vm4, %v2691_v28  ;;  %v1591_v24 = vsel %vm387_vm2, %v2691_v28, 0.0 }
 0x3e4   : > { %2692 = vpow2.f32 %v1703_v59  ;;  %1592 = vadd.xlane.f32.xlu2 %v1591_v24  ;;  %1838 = vmatpush.msra.mxu3 %v3407_v4 }
 0x3e5   : > { %2694 = vpow2.f32 %v1646_v47 }
 0x3e7   : > { %v1757_v22 = vpop.xlane.xlu1 %1756  ;;  %v1813_v2 = vpop.xlane.xlu0 %1812 }
 0x3e8   : > { %v1758_v30 = vsub.f32 %v3487_v49, %v1757_v22  ;;  %v1814_v48 = vsub.f32 %v3494_v60, %v1813_v2 }
 0x3ea   : > { %v2693_v53 = vpop.eup %2692  ;;  %v1759_v18 = vmul.f32 1.442695, %v1758_v30  ;;  %v1815_v55 = vmul.f32 1.442695, %v1814_v48 }
 0x3eb   : > { %v2695_v57 = vpop.eup %2694  ;;  %2599 = vmatmul.msk.f32.vlgmr.msrb.gmra.mxu3 %vm397_vm4, %v2693_v53  ;;  %v1705_v61 = vsel %vm387_vm2, %v2693_v53, 0.0 }
 0x3ec   : > { %2696 = vpow2.f32 %v1759_v18  ;;  %2598 = vmatmul.msk.f32.vlgmr.msrb.gmra.mxu1 %vm455_vm3, %v2695_v57  ;;  %v1648_v4 = vsel %vm445_vm1, %v2695_v57, 0.0  ;;  %1706 = vadd.xlane.f32.xlu1 %v1705_v61 }
 0x3ed   : > { %2698 = vpow2.f32 %v1815_v55  ;;  %1649 = vadd.xlane.f32.xlu0 %v1648_v4  ;;  %1950 = vmatpush.msrb.mxu3 %v3421_v39 }
 0x3ee   : > { %1893 = vmatpush.msrb.mxu1 %v3411_v16 }
 0x3ef   : > { %v1925_v49 = vpop.xlane.xlu2 %1924  ;;  %v1869_v60 = vpop.xlane.xlu0 %1868 }
 0x3f0   : > { %v1926_v29 = vsub.f32 %v3502_v58, %v1925_v49  ;;  %v1870_v10 = vsub.f32 %v3492_v9, %v1869_v60  ;;  %1894 = vmatpush.msrb.mxu1 %v3416_v20 }
 0x3f2   : > { %v2697_v11 = vpop.eup %2696  ;;  %v1927_v8 = vmul.f32 1.442695, %v1926_v29  ;;  %v1871_v7 = vmul.f32 1.442695, %v1870_v10 }
 0x3f3   : > { %v2699_v52 = vpop.eup %2698  ;;  %v1761_v12 = vsel %vm445_vm1, %v2697_v11, 0.0 }
 0x3f4   : > { %2700 = vpow2.f32 %v1927_v8  ;;  %2600 = vmatmul.msk.f32.vlgmr.msra.gmra.mxu1 %vm455_vm3, %v2697_v11  ;;  %2601 = vmatmul.msk.f32.vlgmr.msra.gmra.mxu3 %vm397_vm4, %v2699_v52 }
 0x3f5   : > { %2702 = vpow2.f32 %v1871_v7  ;;  %1762 = vadd.xlane.f32.xlu2 %v1761_v12  ;;  %2062 = vmatpush.msra.mxu3 %v3435_v32 }
 0x3f6   : > { %2005 = vmatpush.msra.mxu1 %v3425_v43 }
 0x3f7   : > { %v2037_v16 = vpop.xlane.xlu1 %2036  ;;  %v1981_v39 = vpop.xlane.xlu2 %1980 }
 0x3f8   : > { %v2038_v20 = vsub.f32 %v3508_v35, %v2037_v16  ;;  %v1982_v9 = vsub.f32 %v3500_v33, %v1981_v39  ;;  %2006 = vmatpush.msra.mxu1 %v3430_v45 }
 0x3fa   : > { %v2701_v58 = vpop.eup %2700  ;;  %v2039_v51 = vmul.f32 1.442695, %v2038_v20  ;;  %v1983_v34 = vmul.f32 1.442695, %v1982_v9 }
 0x3fb   : > { %v2703_v0 = vpop.eup %2702  ;;  %v1929_v1 = vsel %vm387_vm2, %v2701_v58, 0.0 }
 0x3fc   : > { %2704 = vpow2.f32 %v2039_v51  ;;  %2602 = vmatmul.msk.f32.vlgmr.msrb.gmra.mxu1 %vm455_vm3, %v2703_v0  ;;  %2603 = vmatmul.msk.f32.vlgmr.msrb.gmra.mxu3 %vm397_vm4, %v2701_v58  ;;  %v1873_v43 = vsel %vm445_vm1, %v2703_v0, 0.0 }
 0x3fd   : > { %2706 = vpow2.f32 %v1983_v34  ;;  %1930 = vadd.xlane.f32.xlu1 %v1929_v1  ;;  %1874 = vadd.xlane.f32.xlu0 %v1873_v43 }
 0x3fe   : > { %2174 = vmatpush.msrb.mxu3 %v3449_v40  ;;  %2117 = vmatpush.msrb.mxu1 %v3439_v13  ;;  %v1817_v13 = vsel %vm387_vm2, %v2699_v52, 0.0 }
 0x3ff   : > { %v2093_v45 = vpop.xlane.xlu1 %2092  ;;  %v2149_v32 = vpop.xlane.xlu0 %2148 }
 0x400   : > { %v2094_v33 = vsub.f32 %v3514_v14, %v2093_v45  ;;  %v2150_v35 = vsub.f32 %v3516_v15, %v2149_v32  ;;  %2118 = vmatpush.msrb.mxu1 %v3444_v6 }
 0x402   : > { %v2705_v50 = vpop.eup %2704  ;;  %v2095_v54 = vmul.f32 1.442695, %v2094_v33  ;;  %v2151_v42 = vmul.f32 1.442695, %v2150_v35 }
 0x403   : > { %v2707_v5 = vpop.eup %2706 }
 0x404   : > { %2708 = vpow2.f32 %v2095_v54  ;;  %2604 = vmatmul.msk.f32.vlgmr.msra.gmra.mxu1 %vm455_vm3, %v2707_v5  ;;  %2605 = vmatmul.msk.f32.vlgmr.msra.gmra.mxu3 %vm397_vm4, %v2705_v50  ;;  %v1985_v40 = vsel %vm445_vm1, %v2707_v5, 0.0 }
 0x405   : > { %2710 = vpow2.f32 %v2151_v42  ;;  %1986 = vadd.xlane.f32.xlu2 %v1985_v40  ;;  %1818 = vadd.xlane.f32.xlu0 %v1817_v13 }
 0x406   : > { %2286 = vmatpush.msra.mxu3 %v3463_v25  ;;  %2229 = vmatpush.msra.mxu1 %v3453_v26  ;;  %v2041_v26 = vsel %vm387_vm2, %v2705_v50, 0.0 }
 0x407   : > { %v2261_v6 = vpop.xlane.xlu2 %2260  ;;  %v2205_v14 = vpop.xlane.xlu0 %2204 }
 0x408   : > { %v2262_v15 = vsub.f32 %v3524_v56, %v2261_v6  ;;  %v2206_v31 = vsub.f32 %v3522_v3, %v2205_v14  ;;  %2230 = vmatpush.msra.mxu1 %v3458_v36 }
 0x40a   : > { %v2709_v44 = vpop.eup %2708  ;;  %v2263_v19 = vmul.f32 1.442695, %v2262_v15  ;;  %v2207_v27 = vmul.f32 1.442695, %v2206_v31 }
 0x40b   : > { %v2711_v23 = vpop.eup %2710  ;;  %v2097_v17 = vsel %vm445_vm1, %v2709_v44, 0.0 }
 0x40c   : > { %2712 = vpow2.f32 %v2263_v19  ;;  %2606 = vmatmul.msk.f32.vlgmr.msrb.gmra.mxu1 %vm455_vm3, %v2709_v44  ;;  %2607 = vmatmul.msk.f32.vlgmr.msrb.gmra.mxu3 %vm397_vm4, %v2711_v23  ;;  %v2153_v25 = vsel %vm387_vm2, %v2711_v23, 0.0 }
 0x40d   : > { %2714 = vpow2.f32 %v2207_v27  ;;  %2098 = vadd.xlane.f32.xlu1 %v2097_v17  ;;  %2042 = vadd.xlane.f32.xlu0 %v2041_v26 }
 0x40e   : > { %2154 = vadd.xlane.f32.xlu2 %v2153_v25  ;;  %2398 = vmatpush.msrb.mxu3 %v3477_v41 }
 0x40f   : > { %v2373_v36 = vpop.xlane.xlu1 %2372  ;;  %v2317_v3 = vpop.xlane.xlu2 %2316  ;;  %2341 = vmatpush.msrb.mxu1 %v3467_v62 }
 0x410   : > { %v2374_v56 = vsub.f32 %v3532_v21, %v2373_v36  ;;  %v2318_v37 = vsub.f32 %v3530_v38, %v2317_v3 }
 0x411   : > { %2342 = vmatpush.msrb.mxu1 %v3472_v63 }
 0x412   : > { %v2713_v46 = vpop.eup %2712  ;;  %v2375_v28 = vmul.f32 1.442695, %v2374_v56  ;;  %v2319_v59 = vmul.f32 1.442695, %v2318_v37 }
 0x413   : > { %v2715_v47 = vpop.eup %2714  ;;  %v2265_v24 = vsel %vm387_vm2, %v2713_v46, 0.0 }
 0x414   : > { %2716 = vpow2.f32 %v2375_v28  ;;  %2608 = vmatmul.msk.f32.vlgmr.msra.gmra.mxu1 %vm455_vm3, %v2715_v47  ;;  %2609 = vmatmul.msk.f32.vlgmr.msra.gmra.mxu3 %vm397_vm4, %v2713_v46  ;;  %v2209_v41 = vsel %vm445_vm1, %v2715_v47, 0.0 }
 0x415   : > { %2718 = vpow2.f32 %v2319_v59  ;;  %2266 = vadd.xlane.f32.xlu1 %v2265_v24  ;;  %2210 = vadd.xlane.f32.xlu0 %v2209_v41 }
 0x41a   : > { %v2717_v62 = vpop.eup %2716 }
 0x41b   : > { %v2719_v38 = vpop.eup %2718  ;;  %v2377_v63 = vsel %vm387_vm2, %v2717_v62, 0.0 }
 0x41c   : > { %2610 = vmatmul.msk.f32.vlgmr.msrb.gmra.mxu1 %vm455_vm3, %v2719_v38  ;;  %2611 = vmatmul.msk.f32.vlgmr.msrb.gmra.mxu3 %vm397_vm4, %v2717_v62  ;;  %v2321_v21 = vsel %vm445_vm1, %v2719_v38, 0.0 }
 0x41d   : > { %2322 = vadd.xlane.f32.xlu2 %v2321_v21  ;;  %2378 = vadd.xlane.f32.xlu0 %v2377_v63 }
 0x44b   : > { %v1539_v55 = vpop.xlane.xlu1 %1538 }
 0x44c   : > { %2720 = vrcp.f32 %v1539_v55 }
 0x452   : > { %v2721_v51 = vpop.eup %2720 }
 0x454   : > { %v1560_v22 = vpop.f32.mrf.mxu1 }
 0x455   : > { %v1564_v23 = vmul.f32 %v2721_v51, %v1560_v22 }
 0x457   : > { %v1593_v53 = vpop.xlane.xlu2 %1592 }
 0x45f   : > { %v1707_v49 = vpop.xlane.xlu1 %1706 }
 0x460   : > { %v1650_v30 = vpop.xlane.xlu0 %1649  ;;  %2722 = vrcp.f32 %v1707_v49 }
 0x461   : > { %2724 = vrcp.f32 %v1650_v30 }
 0x466   : > { %v3601_v2 = vpop.f32.mrf.mxu3  ;;  %v2723_v34 = vpop.eup %2722 }
 0x467   : > { %v2725_v0 = vpop.eup %2724 }
 0x468   : > { %v1763_v4 = vpop.xlane.xlu2 %1762 }
 0x469   : > { %v1671_v48 = vpop.f32.mrf.mxu1  ;;  %2726 = vrcp.f32 %v1763_v4 }
 0x46a   : > { %v1675_v43 = vmul.f32 %v2725_v0, %v1671_v48 }
 0x46c   : > { %v2408_v6 = vrot.slane %v1675_v43, 7 }
 0x46e   : > { %v1728_v18 = vpop.f32.mrf.mxu3  ;;  %v2448_v37 = vsel %vm1344_vm5, %v1564_v23, %v2408_v6 }
 0x46f   : > { %v2727_v1 = vpop.eup %2726  ;;  %v1732_v31 = vmul.f32 %v2723_v34, %v1728_v18 }
 0x470   : > { %v1875_v57 = vpop.xlane.xlu0 %1874  ;;  %v1931_v8 = vpop.xlane.xlu1 %1930 }
 0x471   : > { %v1784_v61 = vpop.f32.mrf.mxu1  ;;  %2728 = vrcp.f32 %v1875_v57  ;;  %v2407_v47 = vrot.slane %v1732_v31, 7 }
 0x472   : > { %v1788_v33 = vmul.f32 %v2727_v1, %v1784_v61 }
 0x474   : > { %v2414_v44 = vrot.slane %v1788_v33, 6 }
 0x476   : > { %v2450_v24 = vsel %vm1347_vm6, %v2448_v37, %v2414_v44 }
 0x477   : > { %v1840_v60 = vpop.f32.mrf.mxu3  ;;  %v2729_v32 = vpop.eup %2728 }
 0x478   : > { %v1819_v29 = vpop.xlane.xlu0 %1818  ;;  %v1987_v11 = vpop.xlane.xlu2 %1986 }
 0x479   : > { %v1896_v10 = vpop.f32.mrf.mxu1  ;;  %2730 = vrcp.f32 %v1987_v11 }
 0x47a   : > { %2732 = vrcp.f32 %v1819_v29  ;;  %v1900_v40 = vmul.f32 %v2729_v32, %v1896_v10 }
 0x47c   : > { %v2420_v36 = vrot.slane %v1900_v40, 5 }
 0x47e   : > { %v2452_v18 = vsel %vm1350_vm7, %v2450_v24, %v2420_v36 }
 0x47f   : > { %v1952_v7 = vpop.f32.mrf.mxu3  ;;  %v2731_v50 = vpop.eup %2730 }
 0x480   : > { %v2043_v52 = vpop.xlane.xlu0 %2042  ;;  %v2099_v16 = vpop.xlane.xlu1 %2098 }
 0x481   : > { %v2008_v12 = vpop.f32.mrf.mxu1  ;;  %v2155_v20 = vpop.xlane.xlu2 %2154  ;;  %2734 = vrcp.f32 %v2099_v16 }
 0x482   : > { %v2733_v5 = vpop.eup %2732  ;;  %v2012_v14 = vmul.f32 %v2731_v50, %v2008_v12 }
 0x483   : > { %v1844_v17 = vmul.f32 %v2733_v5, %v1840_v60 }
 0x484   : > { %v2426_v46 = vrot.slane %v2012_v14, 4 }
 0x485   : > { %v2413_v63 = vrot.slane %v1844_v17, 6 }
 0x486   : > { %v2454_v61 = vsel %vm1353_vm8, %v2452_v18, %v2426_v46 }
 0x487   : > { %v2064_v39 = vpop.f32.mrf.mxu3  ;;  %v2735_v13 = vpop.eup %2734 }
 0x488   : > { %v2211_v58 = vpop.xlane.xlu0 %2210  ;;  %v2267_v54 = vpop.xlane.xlu1 %2266 }
 0x489   : > { %v2120_v9 = vpop.f32.mrf.mxu1  ;;  %2736 = vrcp.f32 %v2211_v58 }
 0x48a   : > { %2738 = vrcp.f32 %v1593_v53  ;;  %v2124_v19 = vmul.f32 %v2735_v13, %v2120_v9 }
 0x48b   : > { %2740 = vrcp.f32 %v2043_v52 }
 0x48c   : > { %2742 = vrcp.f32 %v1931_v8  ;;  %v2432_v62 = vrot.slane %v2124_v19, 3 }
 0x48d   : > { %2744 = vrcp.f32 %v2155_v20 }
 0x48e   : > { %v2456_v29 = vsel %vm1356_vm9, %v2454_v61, %v2432_v62 }
 0x48f   : > { %v2176_v45 = vpop.f32.mrf.mxu3  ;;  %v2737_v15 = vpop.eup %2736 }
 0x490   : > { %v2323_v35 = vpop.xlane.xlu2 %2322  ;;  %v2739_v27 = vpop.eup %2738 }
 0x491   : > { %v2232_v42 = vpop.f32.mrf.mxu1  ;;  %2746 = vrcp.f32 %v2323_v35  ;;  %v2741_v25 = vpop.eup %2740  ;;  %v1618_v53 = vmul.f32 %v2739_v27, %v3601_v2 }
 0x492   : > { %2748 = vrcp.f32 %v2267_v54  ;;  %v2236_v26 = vmul.f32 %v2737_v15, %v2232_v42  ;;  %v2379_v3 = vpop.xlane.xlu0 %2378  ;;  %v2743_v56 = vpop.eup %2742  ;;  %v2068_v21 = vmul.f32 %v2741_v25, %v2064_v39 }
 0x493   : > { %v2745_v59 = vpop.eup %2744  ;;  %v1956_v41 = vmul.f32 %v2743_v56, %v1952_v7  ;;  %2750 = vrcp.f32 %v2379_v3  ;;  %v2447_v49 = vsel %vm1344_vm5, %v1618_v53, %v2407_v47 }
 0x494   : > { %v2438_v22 = vrot.slane %v2236_v26, 2  ;;  %v2180_v55 = vmul.f32 %v2745_v59, %v2176_v45  ;;  %v2449_v11 = vsel %vm1347_vm6, %v2447_v49, %v2413_v63  ;;  %v2425_v2 = vrot.slane %v2068_v21, 4 }
 0x495   : > { %v2419_v60 = vrot.slane %v1956_v41, 5 }
 0x496   : > { %v2458_v8 = vsel %vm1359_vm10, %v2456_v29, %v2438_v22  ;;  %v2431_v7 = vrot.slane %v2180_v55, 3 }
 0x497   : > { %v2288_v28 = vpop.f32.mrf.mxu3  ;;  %v2747_v38 = vpop.eup %2746  ;;  %v2451_v20 = vsel %vm1350_vm7, %v2449_v11, %v2419_v60 }
 0x498   : > { %v2749_v48 = vpop.eup %2748  ;;  %v2453_v58 = vsel %vm1353_vm8, %v2451_v20, %v2425_v2 }
 0x499   : > { %v2344_v30 = vpop.f32.mrf.mxu1  ;;  %v2292_v4 = vmul.f32 %v2749_v48, %v2288_v28  ;;  %v2751_v12 = vpop.eup %2750  ;;  %v2455_v51 = vsel %vm1356_vm9, %v2453_v58, %v2431_v7 }
 0x49a   : > { %v2348_v57 = vmul.f32 %v2747_v38, %v2344_v30 }
 0x49b   : > { %v2437_v16 = vrot.slane %v2292_v4, 2 }
 0x49c   : > { %v2444_v10 = vrot.slane %v2348_v57, 1 }
 0x49d   : > { %v2457_v0 = vsel %vm1359_vm10, %v2455_v51, %v2437_v16 }
 0x49e   : > { %v2460_v52 = vsel %vm1362_vm11, %v2458_v8, %v2444_v10 }
 0x49f   : > { %2462 = vst [vmem:[%s268_s19 + $0x8] sm:$0xff] %v2460_v52  ;;  %v2400_v39 = vpop.f32.mrf.mxu3 }
 0x4a0   : > { %v2404_v9 = vmul.f32 %v2751_v12, %v2400_v39 }
 0x4a2   : > { %v2443_v34 = vrot.slane %v2404_v9, 1 }
 0x4a4   : > { %v2459_v1 = vsel %vm1362_vm11, %v2457_v0, %v2443_v34 }
 0x4a5   : > { %2461 = vst [vmem:[%s268_s19] sm:$0xff] %v2459_v1 }
 0x4a6 PF: > { %s15_s18 = sadd.s32 1, %s2779_s18  }
 0x4a7   : > { %p12_p5 = scmp.ge.s32.totalorder %s15_s18, 4  }
 0x4a9   :  { %14 = sbr.rel (!%p12_p5) target bundleno = 1 (0x1), region = 90 }

</bundles_post_ra>
